<compile_context>
chip_gen: v5e
topology: v5e:2x2
jax: 0.10.0
libtpu: 0.0.40
codegen_flags: <defaults>
</compile_context>

<pallas_src>
import functools

import numpy as np
import jax
import jax.numpy as jnp
from jax.experimental import pallas as pl
from jax.experimental.pallas import tpu as pltpu

KERNEL_SIZE = 7
PAD = KERNEL_SIZE // 2


def _spatial_attention_kernel(wv_ref, x_ref, o_ref, sum_ref, max_ref, *,
                              c_total, width, c_chunk):
    # wv_ref  : VMEM (2*K*K, HW)  masked per-tap weight rows (f32)
    # x_ref   : VMEM (Bt, Cblk, HW) input block (flattened spatial)
    # o_ref   : VMEM (Bt, 1, HW)  output block (flattened spatial)
    # sum_ref : VMEM (Bt, HW) f32 running channel sum
    # max_ref : VMEM (Bt, HW) f32 running channel max
    K = KERNEL_SIZE
    k = pl.program_id(1)
    bt, c_blk, hw = x_ref.shape

    @pl.when(k == 0)
    def _init():
        sum_ref[...] = jnp.zeros_like(sum_ref)
        max_ref[...] = jnp.full_like(max_ref, -jnp.inf)

    # ---- streaming channel reduction (lane-dense, accumulates into VMEM) ----
    if c_blk // c_chunk <= 1:
        v = x_ref[...].astype(jnp.float32)
        sum_ref[...] = sum_ref[...] + jnp.sum(v, axis=1)
        max_ref[...] = jnp.maximum(max_ref[...], jnp.max(v, axis=1))
    else:
        def _chunk(i, carry):
            start = pl.multiple_of(i * c_chunk, c_chunk)
            v = x_ref[:, pl.ds(start, c_chunk), :].astype(jnp.float32)
            sum_ref[...] = sum_ref[...] + jnp.sum(v, axis=1)
            max_ref[...] = jnp.maximum(max_ref[...], jnp.max(v, axis=1))
            return carry

        jax.lax.fori_loop(0, c_blk // c_chunk, _chunk, 0, unroll=False)

    # ---- last C step: 7x7 conv on [avg, max] planes + sigmoid + store ----
    @pl.when(k == pl.num_programs(1) - 1)
    def _finalize():
        inv_c = 1.0 / float(c_total)

        def conv_one(b):
            avg = sum_ref[pl.ds(b, 1), :] * inv_c            # (1, HW)
            mxv = max_ref[pl.ds(b, 1), :]                    # (1, HW)
            # Doubled copies so every tap shift is a plain static lane slice
            # (full vreg width; wrapped lanes are zeroed by the weight masks).
            avg2 = jnp.concatenate([avg, avg], axis=-1)      # (1, 2*HW)
            mx2 = jnp.concatenate([mxv, mxv], axis=-1)
            acc = jnp.zeros((1, hw), jnp.float32)
            for dy in range(K):
                for dx in range(K):
                    t = dy * K + dx
                    shift = ((dy - PAD) * width + (dx - PAD)) % hw
                    ra = avg2[:, shift:shift + hw] if shift else avg
                    rm = mx2[:, shift:shift + hw] if shift else mxv
                    acc = (acc
                           + wv_ref[t:t + 1, :] * ra
                           + wv_ref[K * K + t:K * K + t + 1, :] * rm)
            o_ref[pl.ds(b, 1), 0, :] = jax.nn.sigmoid(acc).astype(o_ref.dtype)

        if bt == 1:
            conv_one(0)                                      # fully static path
        else:
            jax.lax.fori_loop(0, bt, lambda i, c: (conv_one(i), c)[1], 0,
                              unroll=bt <= 4)


def _divisors(n):
    return [d for d in range(1, n + 1) if n % d == 0]


def _pick_blocks(batch, chans, hw, itemsize, block_budget):
    """Pick (batch_block, channel_block) honoring the (8,128) rule + budget."""
    # Channel-block candidates: multiples of 8 dividing C, plus C itself.
    c_cands = sorted({c for c in range(8, chans + 1, 8) if chans % c == 0}
                     | {chans})
    fitting = [c for c in c_cands if c * hw * itemsize <= block_budget]
    if not fitting:
        c_blk = c_cands[0]
    else:
        multi = [c for c in fitting if chans // c >= 2]   # prefer >=2 C steps
        c_blk = max(multi) if multi else max(fitting)
    k_steps = chans // c_blk
    # Keep total grid depth >= ~4 where possible (2 TCs on v7x + pipelining).
    min_batch_steps = max(1, 4 // k_steps)
    b_blk = 1
    for b in _divisors(batch):
        if b * c_blk * hw * itemsize > block_budget:
            continue
        if b > 1 and batch // b < min_batch_steps:
            continue
        b_blk = b
    return b_blk, c_blk


def _pick_c_chunk(b_blk, c_blk, hw, itemsize):
    """Channel sub-chunk for the in-kernel streaming reduction."""
    if c_blk % 8 != 0 or c_blk <= 8:
        return c_blk
    target = 1 << 20                      # ~1 MiB of in-flight values per chunk
    chunk = 8
    for cand in range(8, c_blk + 1, 8):
        if c_blk % cand == 0 and b_blk * cand * hw * itemsize <= target:
            chunk = cand
    return chunk


def spatial_attention(x, conv_weight):
    """x: (B, C, H, W); conv_weight: (1, 2, K, K).  Returns (B, 1, H, W)."""
    B, C, H, W = x.shape
    K = KERNEL_SIZE
    assert conv_weight.shape == (1, 2, K, K)
    HW = H * W
    itemsize = jnp.dtype(x.dtype).itemsize

    # Masked per-tap weight rows:
    #   wv[c*K*K + dy*K + dx, y*W + x] =
    #       w[0, c, dy, dx] * [0 <= y+dy-PAD < H] * [0 <= x+dx-PAD < W]
    masks = np.zeros((K * K, H, W), np.float32)
    for dy in range(K):
        for dx in range(K):
            y0, y1 = max(0, PAD - dy), min(H, H + PAD - dy)
            x0, x1 = max(0, PAD - dx), min(W, W + PAD - dx)
            masks[dy * K + dx, y0:y1, x0:x1] = 1.0
    masks = jnp.asarray(masks.reshape(1, K * K, HW))
    wv = (conv_weight.astype(jnp.float32).reshape(2, K * K, 1) * masks)
    wv = wv.reshape(2 * K * K, HW)
    # TODO(synk): for very large H*W, replace this (2*K*K, HW) table with
    # factorized row/col masks (14*HW) or a padded-scratch conv to bound VMEM.

    # Generation-aware VMEM budget and block sizes.
    try:
        vmem_cap = int(pltpu.get_tpu_info().vmem_capacity_bytes)
    except Exception:
        vmem_cap = 64 * 2 ** 20           # conservative (v7x-sized) fallback
    vmem_limit = min(vmem_cap * 3 // 4, 100 * 2 ** 20)
    block_budget = min(vmem_limit // 4, 16 * 2 ** 20)

    b_blk, c_blk = _pick_blocks(B, C, HW, itemsize, block_budget)
    c_chunk = _pick_c_chunk(b_blk, c_blk, HW, itemsize)
    grid = (B // b_blk, C // c_blk)

    kernel = functools.partial(_spatial_attention_kernel,
                               c_total=C, width=W, c_chunk=c_chunk)

    cost = pl.CostEstimate(
        flops=int(B * HW * (2 * C + 4 * K * K)),
        transcendentals=int(B * HW),
        bytes_accessed=int(x.size * itemsize + B * HW * itemsize + wv.size * 4),
    )

    out = pl.pallas_call(
        kernel,
        out_shape=jax.ShapeDtypeStruct((B, 1, HW), x.dtype),
        grid_spec=pltpu.PrefetchScalarGridSpec(
            num_scalar_prefetch=0,
            grid=grid,
            in_specs=[
                pl.BlockSpec((2 * K * K, HW), lambda g, k: (0, 0)),  # masked W
                pl.BlockSpec((b_blk, c_blk, HW), lambda g, k: (g, k, 0)),
            ],
            out_specs=pl.BlockSpec((b_blk, 1, HW), lambda g, k: (g, 0, 0)),
            scratch_shapes=[
                pltpu.VMEM((b_blk, HW), jnp.float32),   # running channel sum
                pltpu.VMEM((b_blk, HW), jnp.float32),   # running channel max
            ],
        ),
        compiler_params=pltpu.CompilerParams(
            dimension_semantics=("parallel", "arbitrary"),
            vmem_limit_bytes=int(vmem_limit),
        ),
        cost_estimate=cost,
    )(wv, x.reshape(B, C, HW))

    return out.reshape(B, 1, H, W)


def spatial_attention_reference(x, conv_weight):
    avg_out = jnp.mean(x, axis=1, keepdims=True)
    max_out = jnp.max(x, axis=1, keepdims=True)
    x_cat = jnp.concatenate([avg_out, max_out], axis=1)
    y = jax.lax.conv_general_dilated(
        x_cat, conv_weight,
        window_strides=(1, 1),
        padding=((PAD, PAD), (PAD, PAD)),
        dimension_numbers=("NCHW", "OIHW", "NCHW"))
    return jax.nn.sigmoid(y)


if __name__ == "__main__":
    key = jax.random.PRNGKey(0)
    kx, kw = jax.random.split(key)

    B, C, H, W = 2, 4, 16, 16
    x = jax.random.normal(kx, (B, C, H, W), dtype=jnp.float32)

    # Deterministic conv weight init (kaiming-uniform-style bound, like nn.Conv2d).
    fan_in = 2 * KERNEL_SIZE * KERNEL_SIZE
    bound = 1.0 / float(np.sqrt(fan_in))
    conv_weight = jax.random.uniform(
        kw, (1, 2, KERNEL_SIZE, KERNEL_SIZE),
        minval=-bound, maxval=bound, dtype=jnp.float32)

    out = jax.block_until_ready(spatial_attention(x, conv_weight))
    ref = spatial_attention_reference(x, conv_weight)

    assert out.shape == (B, 1, H, W)
    assert jnp.allclose(out, ref, atol=1e-5, rtol=1e-5), "mismatch vs JAX reference"

    print("KERNEL_OK")
</pallas_src>

<mosaic_0001>
module attributes {stable_mosaic.version = 11 : i64} {
  func.func @_spatial_attention_kernel(%arg0: i32, %arg1: i32, %arg2: memref<98x256xf32, #tpu.memory_space<vmem>>, %arg3: memref<1x4x256xf32, #tpu.memory_space<vmem>>, %arg4: memref<1x1x256xf32, #tpu.memory_space<vmem>>, %arg5: memref<1x256xf32, #tpu.memory_space<vmem>>, %arg6: memref<1x256xf32, #tpu.memory_space<vmem>>) attributes {dimension_semantics = [#tpu.dimension_semantics<parallel>, #tpu.dimension_semantics<arbitrary>], iteration_bounds = array<i64: 2, 1>, scalar_prefetch = 0 : i64, scratch_operands = 2 : i64, tpu.core_type = #tpu.core_type<tc>, window_params = [{pipeline_mode = #tpu.pipeline_mode<synchronous>, transform_indices = @transform_0, window_bounds = array<i64: 98, 256>}, {transform_indices = @transform_1, window_bounds = array<i64: 1, 4, 256>}, {transform_indices = @transform_2, window_bounds = array<i64: 1, 1, 256>}]} {
    %c0_i32 = arith.constant 0 : i32
    %0 = arith.cmpi eq, %arg1, %c0_i32 : i32
    %1 = arith.extui %0 : i1 to i32
    %c0_i32_0 = arith.constant 0 : i32
    %2 = arith.cmpi ne, %1, %c0_i32_0 : i32
    scf.if %2 {
      %cst_14 = arith.constant 0.000000e+00 : f32
      %15 = vector.broadcast %cst_14 : f32 to vector<1x256xf32>
      %c0_15 = arith.constant 0 : index
      %c0_16 = arith.constant 0 : index
      %16 = vector.load %arg5[%c0_15, %c0_16] : memref<1x256xf32, #tpu.memory_space<vmem>>, vector<1x256xf32>
      tpu.vector_store %arg5[%c0_15, %c0_16], %15 {strides = array<i32>} : memref<1x256xf32, #tpu.memory_space<vmem>>, vector<1x256xf32>,
      %cst_17 = arith.constant 0xFF800000 : f32
      %17 = vector.broadcast %cst_17 : f32 to vector<1x256xf32>
      %c0_18 = arith.constant 0 : index
      %c0_19 = arith.constant 0 : index
      %18 = vector.load %arg6[%c0_18, %c0_19] : memref<1x256xf32, #tpu.memory_space<vmem>>, vector<1x256xf32>
      tpu.vector_store %arg6[%c0_18, %c0_19], %17 {strides = array<i32>} : memref<1x256xf32, #tpu.memory_space<vmem>>, vector<1x256xf32>,
    } else {
    }
    %c0 = arith.constant 0 : index
    %c0_1 = arith.constant 0 : index
    %c0_2 = arith.constant 0 : index
    %3 = vector.load %arg3[%c0, %c0_1, %c0_2] : memref<1x4x256xf32, #tpu.memory_space<vmem>>, vector<1x4x256xf32>
    %c0_3 = arith.constant 0 : index
    %c0_4 = arith.constant 0 : index
    %4 = vector.load %arg5[%c0_3, %c0_4] : memref<1x256xf32, #tpu.memory_space<vmem>>, vector<1x256xf32>
    %cst = arith.constant dense<0.000000e+00> : vector<1x256xf32>
    %5 = vector.multi_reduction <add>, %3, %cst [1] : vector<1x4x256xf32> to vector<1x256xf32>
    %6 = arith.addf %4, %5 : vector<1x256xf32>
    %c0_5 = arith.constant 0 : index
    %c0_6 = arith.constant 0 : index
    %7 = vector.load %arg5[%c0_5, %c0_6] : memref<1x256xf32, #tpu.memory_space<vmem>>, vector<1x256xf32>
    tpu.vector_store %arg5[%c0_5, %c0_6], %6 {strides = array<i32>} : memref<1x256xf32, #tpu.memory_space<vmem>>, vector<1x256xf32>,
    %c0_7 = arith.constant 0 : index
    %c0_8 = arith.constant 0 : index
    %8 = vector.load %arg6[%c0_7, %c0_8] : memref<1x256xf32, #tpu.memory_space<vmem>>, vector<1x256xf32>
    %cst_9 = arith.constant dense<0xFF800000> : vector<1x256xf32>
    %9 = vector.multi_reduction <maximumf>, %3, %cst_9 [1] : vector<1x4x256xf32> to vector<1x256xf32>
    %10 = arith.maximumf %8, %9 : vector<1x256xf32>
    %c0_10 = arith.constant 0 : index
    %c0_11 = arith.constant 0 : index
    %11 = vector.load %arg6[%c0_10, %c0_11] : memref<1x256xf32, #tpu.memory_space<vmem>>, vector<1x256xf32>
    tpu.vector_store %arg6[%c0_10, %c0_11], %10 {strides = array<i32>} : memref<1x256xf32, #tpu.memory_space<vmem>>, vector<1x256xf32>,
    %c0_i32_12 = arith.constant 0 : i32
    %12 = arith.cmpi eq, %arg1, %c0_i32_12 : i32
    %13 = arith.extui %12 : i1 to i32
    %c0_i32_13 = arith.constant 0 : i32
    %14 = arith.cmpi ne, %13, %c0_i32_13 : i32
    scf.if %14 {
      %c0_14 = arith.constant 0 : index
      %c0_15 = arith.constant 0 : index
      %15 = vector.load %arg5[%c0_14, %c0_15] : memref<1x256xf32, #tpu.memory_space<vmem>>, vector<1x256xf32>
      %cst_16 = arith.constant 2.500000e-01 : f32
      %16 = vector.broadcast %cst_16 : f32 to vector<1x256xf32>
      %17 = arith.mulf %15, %16 : vector<1x256xf32>
      %c0_17 = arith.constant 0 : index
      %c0_18 = arith.constant 0 : index
      %18 = vector.load %arg6[%c0_17, %c0_18] : memref<1x256xf32, #tpu.memory_space<vmem>>, vector<1x256xf32>
      %19 = tpu.concatenate %17, %17 in 1 : vector<1x256xf32>, vector<1x256xf32> -> vector<1x512xf32>
      %20 = tpu.concatenate %18, %18 in 1 : vector<1x256xf32>, vector<1x256xf32> -> vector<1x512xf32>
      %cst_19 = arith.constant 0.000000e+00 : f32
      %21 = vector.broadcast %cst_19 : f32 to vector<1x256xf32>
      %22 = vector.extract_strided_slice %19 {offsets = [0, 205], sizes = [1, 256], strides = [1, 1]} : vector<1x512xf32> to vector<1x256xf32>
      %23 = vector.extract_strided_slice %20 {offsets = [0, 205], sizes = [1, 256], strides = [1, 1]} : vector<1x512xf32> to vector<1x256xf32>
      %c0_20 = arith.constant 0 : index
      %c0_21 = arith.constant 0 : index
      %24 = vector.load %arg2[%c0_20, %c0_21] : memref<98x256xf32, #tpu.memory_space<vmem>>, vector<1x256xf32>
      %25 = arith.mulf %24, %22 : vector<1x256xf32>
      %26 = arith.addf %21, %25 : vector<1x256xf32>
      %c49 = arith.constant 49 : index
      %c0_22 = arith.constant 0 : index
      %27 = vector.load %arg2[%c49, %c0_22] : memref<98x256xf32, #tpu.memory_space<vmem>>, vector<1x256xf32>
      %28 = arith.mulf %27, %23 : vector<1x256xf32>
      %29 = arith.addf %26, %28 : vector<1x256xf32>
      %30 = vector.extract_strided_slice %19 {offsets = [0, 206], sizes = [1, 256], strides = [1, 1]} : vector<1x512xf32> to vector<1x256xf32>
      %31 = vector.extract_strided_slice %20 {offsets = [0, 206], sizes = [1, 256], strides = [1, 1]} : vector<1x512xf32> to vector<1x256xf32>
      %c1 = arith.constant 1 : index
      %c0_23 = arith.constant 0 : index
      %32 = vector.load %arg2[%c1, %c0_23] : memref<98x256xf32, #tpu.memory_space<vmem>>, vector<1x256xf32>
      %33 = arith.mulf %32, %30 : vector<1x256xf32>
      %34 = arith.addf %29, %33 : vector<1x256xf32>
      %c50 = arith.constant 50 : index
      %c0_24 = arith.constant 0 : index
      %35 = vector.load %arg2[%c50, %c0_24] : memref<98x256xf32, #tpu.memory_space<vmem>>, vector<1x256xf32>
      %36 = arith.mulf %35, %31 : vector<1x256xf32>
      %37 = arith.addf %34, %36 : vector<1x256xf32>
      %38 = vector.extract_strided_slice %19 {offsets = [0, 207], sizes = [1, 256], strides = [1, 1]} : vector<1x512xf32> to vector<1x256xf32>
      %39 = vector.extract_strided_slice %20 {offsets = [0, 207], sizes = [1, 256], strides = [1, 1]} : vector<1x512xf32> to vector<1x256xf32>
      %c2 = arith.constant 2 : index
      %c0_25 = arith.constant 0 : index
      %40 = vector.load %arg2[%c2, %c0_25] : memref<98x256xf32, #tpu.memory_space<vmem>>, vector<1x256xf32>
      %41 = arith.mulf %40, %38 : vector<1x256xf32>
      %42 = arith.addf %37, %41 : vector<1x256xf32>
      %c51 = arith.constant 51 : index
      %c0_26 = arith.constant 0 : index
      %43 = vector.load %arg2[%c51, %c0_26] : memref<98x256xf32, #tpu.memory_space<vmem>>, vector<1x256xf32>
      %44 = arith.mulf %43, %39 : vector<1x256xf32>
      %45 = arith.addf %42, %44 : vector<1x256xf32>
      %46 = vector.extract_strided_slice %19 {offsets = [0, 208], sizes = [1, 256], strides = [1, 1]} : vector<1x512xf32> to vector<1x256xf32>
      %47 = vector.extract_strided_slice %20 {offsets = [0, 208], sizes = [1, 256], strides = [1, 1]} : vector<1x512xf32> to vector<1x256xf32>
      %c3 = arith.constant 3 : index
      %c0_27 = arith.constant 0 : index
      %48 = vector.load %arg2[%c3, %c0_27] : memref<98x256xf32, #tpu.memory_space<vmem>>, vector<1x256xf32>
      %49 = arith.mulf %48, %46 : vector<1x256xf32>
      %50 = arith.addf %45, %49 : vector<1x256xf32>
      %c52 = arith.constant 52 : index
      %c0_28 = arith.constant 0 : index
      %51 = vector.load %arg2[%c52, %c0_28] : memref<98x256xf32, #tpu.memory_space<vmem>>, vector<1x256xf32>
      %52 = arith.mulf %51, %47 : vector<1x256xf32>
      %53 = arith.addf %50, %52 : vector<1x256xf32>
      %54 = vector.extract_strided_slice %19 {offsets = [0, 209], sizes = [1, 256], strides = [1, 1]} : vector<1x512xf32> to vector<1x256xf32>
      %55 = vector.extract_strided_slice %20 {offsets = [0, 209], sizes = [1, 256], strides = [1, 1]} : vector<1x512xf32> to vector<1x256xf32>
      %c4 = arith.constant 4 : index
      %c0_29 = arith.constant 0 : index
      %56 = vector.load %arg2[%c4, %c0_29] : memref<98x256xf32, #tpu.memory_space<vmem>>, vector<1x256xf32>
      %57 = arith.mulf %56, %54 : vector<1x256xf32>
      %58 = arith.addf %53, %57 : vector<1x256xf32>
      %c53 = arith.constant 53 : index
      %c0_30 = arith.constant 0 : index
      %59 = vector.load %arg2[%c53, %c0_30] : memref<98x256xf32, #tpu.memory_space<vmem>>, vector<1x256xf32>
      %60 = arith.mulf %59, %55 : vector<1x256xf32>
      %61 = arith.addf %58, %60 : vector<1x256xf32>
      %62 = vector.extract_strided_slice %19 {offsets = [0, 210], sizes = [1, 256], strides = [1, 1]} : vector<1x512xf32> to vector<1x256xf32>
      %63 = vector.extract_strided_slice %20 {offsets = [0, 210], sizes = [1, 256], strides = [1, 1]} : vector<1x512xf32> to vector<1x256xf32>
      %c5 = arith.constant 5 : index
      %c0_31 = arith.constant 0 : index
      %64 = vector.load %arg2[%c5, %c0_31] : memref<98x256xf32, #tpu.memory_space<vmem>>, vector<1x256xf32>
      %65 = arith.mulf %64, %62 : vector<1x256xf32>
      %66 = arith.addf %61, %65 : vector<1x256xf32>
      %c54 = arith.constant 54 : index
      %c0_32 = arith.constant 0 : index
      %67 = vector.load %arg2[%c54, %c0_32] : memref<98x256xf32, #tpu.memory_space<vmem>>, vector<1x256xf32>
      %68 = arith.mulf %67, %63 : vector<1x256xf32>
      %69 = arith.addf %66, %68 : vector<1x256xf32>
      %70 = vector.extract_strided_slice %19 {offsets = [0, 211], sizes = [1, 256], strides = [1, 1]} : vector<1x512xf32> to vector<1x256xf32>
      %71 = vector.extract_strided_slice %20 {offsets = [0, 211], sizes = [1, 256], strides = [1, 1]} : vector<1x512xf32> to vector<1x256xf32>
      %c6 = arith.constant 6 : index
      %c0_33 = arith.constant 0 : index
      %72 = vector.load %arg2[%c6, %c0_33] : memref<98x256xf32, #tpu.memory_space<vmem>>, vector<1x256xf32>
      %73 = arith.mulf %72, %70 : vector<1x256xf32>
      %74 = arith.addf %69, %73 : vector<1x256xf32>
      %c55 = arith.constant 55 : index
      %c0_34 = arith.constant 0 : index
      %75 = vector.load %arg2[%c55, %c0_34] : memref<98x256xf32, #tpu.memory_space<vmem>>, vector<1x256xf32>
      %76 = arith.mulf %75, %71 : vector<1x256xf32>
      %77 = arith.addf %74, %76 : vector<1x256xf32>
      %78 = vector.extract_strided_slice %19 {offsets = [0, 221], sizes = [1, 256], strides = [1, 1]} : vector<1x512xf32> to vector<1x256xf32>
      %79 = vector.extract_strided_slice %20 {offsets = [0, 221], sizes = [1, 256], strides = [1, 1]} : vector<1x512xf32> to vector<1x256xf32>
      %c7 = arith.constant 7 : index
      %c0_35 = arith.constant 0 : index
      %80 = vector.load %arg2[%c7, %c0_35] : memref<98x256xf32, #tpu.memory_space<vmem>>, vector<1x256xf32>
      %81 = arith.mulf %80, %78 : vector<1x256xf32>
      %82 = arith.addf %77, %81 : vector<1x256xf32>
      %c56 = arith.constant 56 : index
      %c0_36 = arith.constant 0 : index
      %83 = vector.load %arg2[%c56, %c0_36] : memref<98x256xf32, #tpu.memory_space<vmem>>, vector<1x256xf32>
      %84 = arith.mulf %83, %79 : vector<1x256xf32>
      %85 = arith.addf %82, %84 : vector<1x256xf32>
      %86 = vector.extract_strided_slice %19 {offsets = [0, 222], sizes = [1, 256], strides = [1, 1]} : vector<1x512xf32> to vector<1x256xf32>
      %87 = vector.extract_strided_slice %20 {offsets = [0, 222], sizes = [1, 256], strides = [1, 1]} : vector<1x512xf32> to vector<1x256xf32>
      %c8 = arith.constant 8 : index
      %c0_37 = arith.constant 0 : index
      %88 = vector.load %arg2[%c8, %c0_37] : memref<98x256xf32, #tpu.memory_space<vmem>>, vector<1x256xf32>
      %89 = arith.mulf %88, %86 : vector<1x256xf32>
      %90 = arith.addf %85, %89 : vector<1x256xf32>
      %c57 = arith.constant 57 : index
      %c0_38 = arith.constant 0 : index
      %91 = vector.load %arg2[%c57, %c0_38] : memref<98x256xf32, #tpu.memory_space<vmem>>, vector<1x256xf32>
      %92 = arith.mulf %91, %87 : vector<1x256xf32>
      %93 = arith.addf %90, %92 : vector<1x256xf32>
      %94 = vector.extract_strided_slice %19 {offsets = [0, 223], sizes = [1, 256], strides = [1, 1]} : vector<1x512xf32> to vector<1x256xf32>
      %95 = vector.extract_strided_slice %20 {offsets = [0, 223], sizes = [1, 256], strides = [1, 1]} : vector<1x512xf32> to vector<1x256xf32>
      %c9 = arith.constant 9 : index
      %c0_39 = arith.constant 0 : index
      %96 = vector.load %arg2[%c9, %c0_39] : memref<98x256xf32, #tpu.memory_space<vmem>>, vector<1x256xf32>
      %97 = arith.mulf %96, %94 : vector<1x256xf32>
      %98 = arith.addf %93, %97 : vector<1x256xf32>
      %c58 = arith.constant 58 : index
      %c0_40 = arith.constant 0 : index
      %99 = vector.load %arg2[%c58, %c0_40] : memref<98x256xf32, #tpu.memory_space<vmem>>, vector<1x256xf32>
      %100 = arith.mulf %99, %95 : vector<1x256xf32>
      %101 = arith.addf %98, %100 : vector<1x256xf32>
      %102 = vector.extract_strided_slice %19 {offsets = [0, 224], sizes = [1, 256], strides = [1, 1]} : vector<1x512xf32> to vector<1x256xf32>
      %103 = vector.extract_strided_slice %20 {offsets = [0, 224], sizes = [1, 256], strides = [1, 1]} : vector<1x512xf32> to vector<1x256xf32>
      %c10 = arith.constant 10 : index
      %c0_41 = arith.constant 0 : index
      %104 = vector.load %arg2[%c10, %c0_41] : memref<98x256xf32, #tpu.memory_space<vmem>>, vector<1x256xf32>
      %105 = arith.mulf %104, %102 : vector<1x256xf32>
      %106 = arith.addf %101, %105 : vector<1x256xf32>
      %c59 = arith.constant 59 : index
      %c0_42 = arith.constant 0 : index
      %107 = vector.load %arg2[%c59, %c0_42] : memref<98x256xf32, #tpu.memory_space<vmem>>, vector<1x256xf32>
      %108 = arith.mulf %107, %103 : vector<1x256xf32>
      %109 = arith.addf %106, %108 : vector<1x256xf32>
      %110 = vector.extract_strided_slice %19 {offsets = [0, 225], sizes = [1, 256], strides = [1, 1]} : vector<1x512xf32> to vector<1x256xf32>
      %111 = vector.extract_strided_slice %20 {offsets = [0, 225], sizes = [1, 256], strides = [1, 1]} : vector<1x512xf32> to vector<1x256xf32>
      %c11 = arith.constant 11 : index
      %c0_43 = arith.constant 0 : index
      %112 = vector.load %arg2[%c11, %c0_43] : memref<98x256xf32, #tpu.memory_space<vmem>>, vector<1x256xf32>
      %113 = arith.mulf %112, %110 : vector<1x256xf32>
      %114 = arith.addf %109, %113 : vector<1x256xf32>
      %c60 = arith.constant 60 : index
      %c0_44 = arith.constant 0 : index
      %115 = vector.load %arg2[%c60, %c0_44] : memref<98x256xf32, #tpu.memory_space<vmem>>, vector<1x256xf32>
      %116 = arith.mulf %115, %111 : vector<1x256xf32>
      %117 = arith.addf %114, %116 : vector<1x256xf32>
      %118 = vector.extract_strided_slice %19 {offsets = [0, 226], sizes = [1, 256], strides = [1, 1]} : vector<1x512xf32> to vector<1x256xf32>
      %119 = vector.extract_strided_slice %20 {offsets = [0, 226], sizes = [1, 256], strides = [1, 1]} : vector<1x512xf32> to vector<1x256xf32>
      %c12 = arith.constant 12 : index
      %c0_45 = arith.constant 0 : index
      %120 = vector.load %arg2[%c12, %c0_45] : memref<98x256xf32, #tpu.memory_space<vmem>>, vector<1x256xf32>
      %121 = arith.mulf %120, %118 : vector<1x256xf32>
      %122 = arith.addf %117, %121 : vector<1x256xf32>
      %c61 = arith.constant 61 : index
      %c0_46 = arith.constant 0 : index
      %123 = vector.load %arg2[%c61, %c0_46] : memref<98x256xf32, #tpu.memory_space<vmem>>, vector<1x256xf32>
      %124 = arith.mulf %123, %119 : vector<1x256xf32>
      %125 = arith.addf %122, %124 : vector<1x256xf32>
      %126 = vector.extract_strided_slice %19 {offsets = [0, 227], sizes = [1, 256], strides = [1, 1]} : vector<1x512xf32> to vector<1x256xf32>
      %127 = vector.extract_strided_slice %20 {offsets = [0, 227], sizes = [1, 256], strides = [1, 1]} : vector<1x512xf32> to vector<1x256xf32>
      %c13 = arith.constant 13 : index
      %c0_47 = arith.constant 0 : index
      %128 = vector.load %arg2[%c13, %c0_47] : memref<98x256xf32, #tpu.memory_space<vmem>>, vector<1x256xf32>
      %129 = arith.mulf %128, %126 : vector<1x256xf32>
      %130 = arith.addf %125, %129 : vector<1x256xf32>
      %c62 = arith.constant 62 : index
      %c0_48 = arith.constant 0 : index
      %131 = vector.load %arg2[%c62, %c0_48] : memref<98x256xf32, #tpu.memory_space<vmem>>, vector<1x256xf32>
      %132 = arith.mulf %131, %127 : vector<1x256xf32>
      %133 = arith.addf %130, %132 : vector<1x256xf32>
      %134 = vector.extract_strided_slice %19 {offsets = [0, 237], sizes = [1, 256], strides = [1, 1]} : vector<1x512xf32> to vector<1x256xf32>
      %135 = vector.extract_strided_slice %20 {offsets = [0, 237], sizes = [1, 256], strides = [1, 1]} : vector<1x512xf32> to vector<1x256xf32>
      %c14 = arith.constant 14 : index
      %c0_49 = arith.constant 0 : index
      %136 = vector.load %arg2[%c14, %c0_49] : memref<98x256xf32, #tpu.memory_space<vmem>>, vector<1x256xf32>
      %137 = arith.mulf %136, %134 : vector<1x256xf32>
      %138 = arith.addf %133, %137 : vector<1x256xf32>
      %c63 = arith.constant 63 : index
      %c0_50 = arith.constant 0 : index
      %139 = vector.load %arg2[%c63, %c0_50] : memref<98x256xf32, #tpu.memory_space<vmem>>, vector<1x256xf32>
      %140 = arith.mulf %139, %135 : vector<1x256xf32>
      %141 = arith.addf %138, %140 : vector<1x256xf32>
      %142 = vector.extract_strided_slice %19 {offsets = [0, 238], sizes = [1, 256], strides = [1, 1]} : vector<1x512xf32> to vector<1x256xf32>
      %143 = vector.extract_strided_slice %20 {offsets = [0, 238], sizes = [1, 256], strides = [1, 1]} : vector<1x512xf32> to vector<1x256xf32>
      %c15 = arith.constant 15 : index
      %c0_51 = arith.constant 0 : index
      %144 = vector.load %arg2[%c15, %c0_51] : memref<98x256xf32, #tpu.memory_space<vmem>>, vector<1x256xf32>
      %145 = arith.mulf %144, %142 : vector<1x256xf32>
      %146 = arith.addf %141, %145 : vector<1x256xf32>
      %c64 = arith.constant 64 : index
      %c0_52 = arith.constant 0 : index
      %147 = vector.load %arg2[%c64, %c0_52] : memref<98x256xf32, #tpu.memory_space<vmem>>, vector<1x256xf32>
      %148 = arith.mulf %147, %143 : vector<1x256xf32>
      %149 = arith.addf %146, %148 : vector<1x256xf32>
      %150 = vector.extract_strided_slice %19 {offsets = [0, 239], sizes = [1, 256], strides = [1, 1]} : vector<1x512xf32> to vector<1x256xf32>
      %151 = vector.extract_strided_slice %20 {offsets = [0, 239], sizes = [1, 256], strides = [1, 1]} : vector<1x512xf32> to vector<1x256xf32>
      %c16 = arith.constant 16 : index
      %c0_53 = arith.constant 0 : index
      %152 = vector.load %arg2[%c16, %c0_53] : memref<98x256xf32, #tpu.memory_space<vmem>>, vector<1x256xf32>
      %153 = arith.mulf %152, %150 : vector<1x256xf32>
      %154 = arith.addf %149, %153 : vector<1x256xf32>
      %c65 = arith.constant 65 : index
      %c0_54 = arith.constant 0 : index
      %155 = vector.load %arg2[%c65, %c0_54] : memref<98x256xf32, #tpu.memory_space<vmem>>, vector<1x256xf32>
      %156 = arith.mulf %155, %151 : vector<1x256xf32>
      %157 = arith.addf %154, %156 : vector<1x256xf32>
      %158 = vector.extract_strided_slice %19 {offsets = [0, 240], sizes = [1, 256], strides = [1, 1]} : vector<1x512xf32> to vector<1x256xf32>
      %159 = vector.extract_strided_slice %20 {offsets = [0, 240], sizes = [1, 256], strides = [1, 1]} : vector<1x512xf32> to vector<1x256xf32>
      %c17 = arith.constant 17 : index
      %c0_55 = arith.constant 0 : index
      %160 = vector.load %arg2[%c17, %c0_55] : memref<98x256xf32, #tpu.memory_space<vmem>>, vector<1x256xf32>
      %161 = arith.mulf %160, %158 : vector<1x256xf32>
      %162 = arith.addf %157, %161 : vector<1x256xf32>
      %c66 = arith.constant 66 : index
      %c0_56 = arith.constant 0 : index
      %163 = vector.load %arg2[%c66, %c0_56] : memref<98x256xf32, #tpu.memory_space<vmem>>, vector<1x256xf32>
      %164 = arith.mulf %163, %159 : vector<1x256xf32>
      %165 = arith.addf %162, %164 : vector<1x256xf32>
      %166 = vector.extract_strided_slice %19 {offsets = [0, 241], sizes = [1, 256], strides = [1, 1]} : vector<1x512xf32> to vector<1x256xf32>
      %167 = vector.extract_strided_slice %20 {offsets = [0, 241], sizes = [1, 256], strides = [1, 1]} : vector<1x512xf32> to vector<1x256xf32>
      %c18 = arith.constant 18 : index
      %c0_57 = arith.constant 0 : index
      %168 = vector.load %arg2[%c18, %c0_57] : memref<98x256xf32, #tpu.memory_space<vmem>>, vector<1x256xf32>
      %169 = arith.mulf %168, %166 : vector<1x256xf32>
      %170 = arith.addf %165, %169 : vector<1x256xf32>
      %c67 = arith.constant 67 : index
      %c0_58 = arith.constant 0 : index
      %171 = vector.load %arg2[%c67, %c0_58] : memref<98x256xf32, #tpu.memory_space<vmem>>, vector<1x256xf32>
      %172 = arith.mulf %171, %167 : vector<1x256xf32>
      %173 = arith.addf %170, %172 : vector<1x256xf32>
      %174 = vector.extract_strided_slice %19 {offsets = [0, 242], sizes = [1, 256], strides = [1, 1]} : vector<1x512xf32> to vector<1x256xf32>
      %175 = vector.extract_strided_slice %20 {offsets = [0, 242], sizes = [1, 256], strides = [1, 1]} : vector<1x512xf32> to vector<1x256xf32>
      %c19 = arith.constant 19 : index
      %c0_59 = arith.constant 0 : index
      %176 = vector.load %arg2[%c19, %c0_59] : memref<98x256xf32, #tpu.memory_space<vmem>>, vector<1x256xf32>
      %177 = arith.mulf %176, %174 : vector<1x256xf32>
      %178 = arith.addf %173, %177 : vector<1x256xf32>
      %c68 = arith.constant 68 : index
      %c0_60 = arith.constant 0 : index
      %179 = vector.load %arg2[%c68, %c0_60] : memref<98x256xf32, #tpu.memory_space<vmem>>, vector<1x256xf32>
      %180 = arith.mulf %179, %175 : vector<1x256xf32>
      %181 = arith.addf %178, %180 : vector<1x256xf32>
      %182 = vector.extract_strided_slice %19 {offsets = [0, 243], sizes = [1, 256], strides = [1, 1]} : vector<1x512xf32> to vector<1x256xf32>
      %183 = vector.extract_strided_slice %20 {offsets = [0, 243], sizes = [1, 256], strides = [1, 1]} : vector<1x512xf32> to vector<1x256xf32>
      %c20 = arith.constant 20 : index
      %c0_61 = arith.constant 0 : index
      %184 = vector.load %arg2[%c20, %c0_61] : memref<98x256xf32, #tpu.memory_space<vmem>>, vector<1x256xf32>
      %185 = arith.mulf %184, %182 : vector<1x256xf32>
      %186 = arith.addf %181, %185 : vector<1x256xf32>
      %c69 = arith.constant 69 : index
      %c0_62 = arith.constant 0 : index
      %187 = vector.load %arg2[%c69, %c0_62] : memref<98x256xf32, #tpu.memory_space<vmem>>, vector<1x256xf32>
      %188 = arith.mulf %187, %183 : vector<1x256xf32>
      %189 = arith.addf %186, %188 : vector<1x256xf32>
      %190 = vector.extract_strided_slice %19 {offsets = [0, 253], sizes = [1, 256], strides = [1, 1]} : vector<1x512xf32> to vector<1x256xf32>
      %191 = vector.extract_strided_slice %20 {offsets = [0, 253], sizes = [1, 256], strides = [1, 1]} : vector<1x512xf32> to vector<1x256xf32>
      %c21 = arith.constant 21 : index
      %c0_63 = arith.constant 0 : index
      %192 = vector.load %arg2[%c21, %c0_63] : memref<98x256xf32, #tpu.memory_space<vmem>>, vector<1x256xf32>
      %193 = arith.mulf %192, %190 : vector<1x256xf32>
      %194 = arith.addf %189, %193 : vector<1x256xf32>
      %c70 = arith.constant 70 : index
      %c0_64 = arith.constant 0 : index
      %195 = vector.load %arg2[%c70, %c0_64] : memref<98x256xf32, #tpu.memory_space<vmem>>, vector<1x256xf32>
      %196 = arith.mulf %195, %191 : vector<1x256xf32>
      %197 = arith.addf %194, %196 : vector<1x256xf32>
      %198 = vector.extract_strided_slice %19 {offsets = [0, 254], sizes = [1, 256], strides = [1, 1]} : vector<1x512xf32> to vector<1x256xf32>
      %199 = vector.extract_strided_slice %20 {offsets = [0, 254], sizes = [1, 256], strides = [1, 1]} : vector<1x512xf32> to vector<1x256xf32>
      %c22 = arith.constant 22 : index
      %c0_65 = arith.constant 0 : index
      %200 = vector.load %arg2[%c22, %c0_65] : memref<98x256xf32, #tpu.memory_space<vmem>>, vector<1x256xf32>
      %201 = arith.mulf %200, %198 : vector<1x256xf32>
      %202 = arith.addf %197, %201 : vector<1x256xf32>
      %c71 = arith.constant 71 : index
      %c0_66 = arith.constant 0 : index
      %203 = vector.load %arg2[%c71, %c0_66] : memref<98x256xf32, #tpu.memory_space<vmem>>, vector<1x256xf32>
      %204 = arith.mulf %203, %199 : vector<1x256xf32>
      %205 = arith.addf %202, %204 : vector<1x256xf32>
      %206 = vector.extract_strided_slice %19 {offsets = [0, 255], sizes = [1, 256], strides = [1, 1]} : vector<1x512xf32> to vector<1x256xf32>
      %207 = vector.extract_strided_slice %20 {offsets = [0, 255], sizes = [1, 256], strides = [1, 1]} : vector<1x512xf32> to vector<1x256xf32>
      %c23 = arith.constant 23 : index
      %c0_67 = arith.constant 0 : index
      %208 = vector.load %arg2[%c23, %c0_67] : memref<98x256xf32, #tpu.memory_space<vmem>>, vector<1x256xf32>
      %209 = arith.mulf %208, %206 : vector<1x256xf32>
      %210 = arith.addf %205, %209 : vector<1x256xf32>
      %c72 = arith.constant 72 : index
      %c0_68 = arith.constant 0 : index
      %211 = vector.load %arg2[%c72, %c0_68] : memref<98x256xf32, #tpu.memory_space<vmem>>, vector<1x256xf32>
      %212 = arith.mulf %211, %207 : vector<1x256xf32>
      %213 = arith.addf %210, %212 : vector<1x256xf32>
      %c24 = arith.constant 24 : index
      %c0_69 = arith.constant 0 : index
      %214 = vector.load %arg2[%c24, %c0_69] : memref<98x256xf32, #tpu.memory_space<vmem>>, vector<1x256xf32>
      %215 = arith.mulf %214, %17 : vector<1x256xf32>
      %216 = arith.addf %213, %215 : vector<1x256xf32>
      %c73 = arith.constant 73 : index
      %c0_70 = arith.constant 0 : index
      %217 = vector.load %arg2[%c73, %c0_70] : memref<98x256xf32, #tpu.memory_space<vmem>>, vector<1x256xf32>
      %218 = arith.mulf %217, %18 : vector<1x256xf32>
      %219 = arith.addf %216, %218 : vector<1x256xf32>
      %220 = vector.extract_strided_slice %19 {offsets = [0, 1], sizes = [1, 256], strides = [1, 1]} : vector<1x512xf32> to vector<1x256xf32>
      %221 = vector.extract_strided_slice %20 {offsets = [0, 1], sizes = [1, 256], strides = [1, 1]} : vector<1x512xf32> to vector<1x256xf32>
      %c25 = arith.constant 25 : index
      %c0_71 = arith.constant 0 : index
      %222 = vector.load %arg2[%c25, %c0_71] : memref<98x256xf32, #tpu.memory_space<vmem>>, vector<1x256xf32>
      %223 = arith.mulf %222, %220 : vector<1x256xf32>
      %224 = arith.addf %219, %223 : vector<1x256xf32>
      %c74 = arith.constant 74 : index
      %c0_72 = arith.constant 0 : index
      %225 = vector.load %arg2[%c74, %c0_72] : memref<98x256xf32, #tpu.memory_space<vmem>>, vector<1x256xf32>
      %226 = arith.mulf %225, %221 : vector<1x256xf32>
      %227 = arith.addf %224, %226 : vector<1x256xf32>
      %228 = vector.extract_strided_slice %19 {offsets = [0, 2], sizes = [1, 256], strides = [1, 1]} : vector<1x512xf32> to vector<1x256xf32>
      %229 = vector.extract_strided_slice %20 {offsets = [0, 2], sizes = [1, 256], strides = [1, 1]} : vector<1x512xf32> to vector<1x256xf32>
      %c26 = arith.constant 26 : index
      %c0_73 = arith.constant 0 : index
      %230 = vector.load %arg2[%c26, %c0_73] : memref<98x256xf32, #tpu.memory_space<vmem>>, vector<1x256xf32>
      %231 = arith.mulf %230, %228 : vector<1x256xf32>
      %232 = arith.addf %227, %231 : vector<1x256xf32>
      %c75 = arith.constant 75 : index
      %c0_74 = arith.constant 0 : index
      %233 = vector.load %arg2[%c75, %c0_74] : memref<98x256xf32, #tpu.memory_space<vmem>>, vector<1x256xf32>
      %234 = arith.mulf %233, %229 : vector<1x256xf32>
      %235 = arith.addf %232, %234 : vector<1x256xf32>
      %236 = vector.extract_strided_slice %19 {offsets = [0, 3], sizes = [1, 256], strides = [1, 1]} : vector<1x512xf32> to vector<1x256xf32>
      %237 = vector.extract_strided_slice %20 {offsets = [0, 3], sizes = [1, 256], strides = [1, 1]} : vector<1x512xf32> to vector<1x256xf32>
      %c27 = arith.constant 27 : index
      %c0_75 = arith.constant 0 : index
      %238 = vector.load %arg2[%c27, %c0_75] : memref<98x256xf32, #tpu.memory_space<vmem>>, vector<1x256xf32>
      %239 = arith.mulf %238, %236 : vector<1x256xf32>
      %240 = arith.addf %235, %239 : vector<1x256xf32>
      %c76 = arith.constant 76 : index
      %c0_76 = arith.constant 0 : index
      %241 = vector.load %arg2[%c76, %c0_76] : memref<98x256xf32, #tpu.memory_space<vmem>>, vector<1x256xf32>
      %242 = arith.mulf %241, %237 : vector<1x256xf32>
      %243 = arith.addf %240, %242 : vector<1x256xf32>
      %244 = vector.extract_strided_slice %19 {offsets = [0, 13], sizes = [1, 256], strides = [1, 1]} : vector<1x512xf32> to vector<1x256xf32>
      %245 = vector.extract_strided_slice %20 {offsets = [0, 13], sizes = [1, 256], strides = [1, 1]} : vector<1x512xf32> to vector<1x256xf32>
      %c28 = arith.constant 28 : index
      %c0_77 = arith.constant 0 : index
      %246 = vector.load %arg2[%c28, %c0_77] : memref<98x256xf32, #tpu.memory_space<vmem>>, vector<1x256xf32>
      %247 = arith.mulf %246, %244 : vector<1x256xf32>
      %248 = arith.addf %243, %247 : vector<1x256xf32>
      %c77 = arith.constant 77 : index
      %c0_78 = arith.constant 0 : index
      %249 = vector.load %arg2[%c77, %c0_78] : memref<98x256xf32, #tpu.memory_space<vmem>>, vector<1x256xf32>
      %250 = arith.mulf %249, %245 : vector<1x256xf32>
      %251 = arith.addf %248, %250 : vector<1x256xf32>
      %252 = vector.extract_strided_slice %19 {offsets = [0, 14], sizes = [1, 256], strides = [1, 1]} : vector<1x512xf32> to vector<1x256xf32>
      %253 = vector.extract_strided_slice %20 {offsets = [0, 14], sizes = [1, 256], strides = [1, 1]} : vector<1x512xf32> to vector<1x256xf32>
      %c29 = arith.constant 29 : index
      %c0_79 = arith.constant 0 : index
      %254 = vector.load %arg2[%c29, %c0_79] : memref<98x256xf32, #tpu.memory_space<vmem>>, vector<1x256xf32>
      %255 = arith.mulf %254, %252 : vector<1x256xf32>
      %256 = arith.addf %251, %255 : vector<1x256xf32>
      %c78 = arith.constant 78 : index
      %c0_80 = arith.constant 0 : index
      %257 = vector.load %arg2[%c78, %c0_80] : memref<98x256xf32, #tpu.memory_space<vmem>>, vector<1x256xf32>
      %258 = arith.mulf %257, %253 : vector<1x256xf32>
      %259 = arith.addf %256, %258 : vector<1x256xf32>
      %260 = vector.extract_strided_slice %19 {offsets = [0, 15], sizes = [1, 256], strides = [1, 1]} : vector<1x512xf32> to vector<1x256xf32>
      %261 = vector.extract_strided_slice %20 {offsets = [0, 15], sizes = [1, 256], strides = [1, 1]} : vector<1x512xf32> to vector<1x256xf32>
      %c30 = arith.constant 30 : index
      %c0_81 = arith.constant 0 : index
      %262 = vector.load %arg2[%c30, %c0_81] : memref<98x256xf32, #tpu.memory_space<vmem>>, vector<1x256xf32>
      %263 = arith.mulf %262, %260 : vector<1x256xf32>
      %264 = arith.addf %259, %263 : vector<1x256xf32>
      %c79 = arith.constant 79 : index
      %c0_82 = arith.constant 0 : index
      %265 = vector.load %arg2[%c79, %c0_82] : memref<98x256xf32, #tpu.memory_space<vmem>>, vector<1x256xf32>
      %266 = arith.mulf %265, %261 : vector<1x256xf32>
      %267 = arith.addf %264, %266 : vector<1x256xf32>
      %268 = vector.extract_strided_slice %19 {offsets = [0, 16], sizes = [1, 256], strides = [1, 1]} : vector<1x512xf32> to vector<1x256xf32>
      %269 = vector.extract_strided_slice %20 {offsets = [0, 16], sizes = [1, 256], strides = [1, 1]} : vector<1x512xf32> to vector<1x256xf32>
      %c31 = arith.constant 31 : index
      %c0_83 = arith.constant 0 : index
      %270 = vector.load %arg2[%c31, %c0_83] : memref<98x256xf32, #tpu.memory_space<vmem>>, vector<1x256xf32>
      %271 = arith.mulf %270, %268 : vector<1x256xf32>
      %272 = arith.addf %267, %271 : vector<1x256xf32>
      %c80 = arith.constant 80 : index
      %c0_84 = arith.constant 0 : index
      %273 = vector.load %arg2[%c80, %c0_84] : memref<98x256xf32, #tpu.memory_space<vmem>>, vector<1x256xf32>
      %274 = arith.mulf %273, %269 : vector<1x256xf32>
      %275 = arith.addf %272, %274 : vector<1x256xf32>
      %276 = vector.extract_strided_slice %19 {offsets = [0, 17], sizes = [1, 256], strides = [1, 1]} : vector<1x512xf32> to vector<1x256xf32>
      %277 = vector.extract_strided_slice %20 {offsets = [0, 17], sizes = [1, 256], strides = [1, 1]} : vector<1x512xf32> to vector<1x256xf32>
      %c32 = arith.constant 32 : index
      %c0_85 = arith.constant 0 : index
      %278 = vector.load %arg2[%c32, %c0_85] : memref<98x256xf32, #tpu.memory_space<vmem>>, vector<1x256xf32>
      %279 = arith.mulf %278, %276 : vector<1x256xf32>
      %280 = arith.addf %275, %279 : vector<1x256xf32>
      %c81 = arith.constant 81 : index
      %c0_86 = arith.constant 0 : index
      %281 = vector.load %arg2[%c81, %c0_86] : memref<98x256xf32, #tpu.memory_space<vmem>>, vector<1x256xf32>
      %282 = arith.mulf %281, %277 : vector<1x256xf32>
      %283 = arith.addf %280, %282 : vector<1x256xf32>
      %284 = vector.extract_strided_slice %19 {offsets = [0, 18], sizes = [1, 256], strides = [1, 1]} : vector<1x512xf32> to vector<1x256xf32>
      %285 = vector.extract_strided_slice %20 {offsets = [0, 18], sizes = [1, 256], strides = [1, 1]} : vector<1x512xf32> to vector<1x256xf32>
      %c33 = arith.constant 33 : index
      %c0_87 = arith.constant 0 : index
      %286 = vector.load %arg2[%c33, %c0_87] : memref<98x256xf32, #tpu.memory_space<vmem>>, vector<1x256xf32>
      %287 = arith.mulf %286, %284 : vector<1x256xf32>
      %288 = arith.addf %283, %287 : vector<1x256xf32>
      %c82 = arith.constant 82 : index
      %c0_88 = arith.constant 0 : index
      %289 = vector.load %arg2[%c82, %c0_88] : memref<98x256xf32, #tpu.memory_space<vmem>>, vector<1x256xf32>
      %290 = arith.mulf %289, %285 : vector<1x256xf32>
      %291 = arith.addf %288, %290 : vector<1x256xf32>
      %292 = vector.extract_strided_slice %19 {offsets = [0, 19], sizes = [1, 256], strides = [1, 1]} : vector<1x512xf32> to vector<1x256xf32>
      %293 = vector.extract_strided_slice %20 {offsets = [0, 19], sizes = [1, 256], strides = [1, 1]} : vector<1x512xf32> to vector<1x256xf32>
      %c34 = arith.constant 34 : index
      %c0_89 = arith.constant 0 : index
      %294 = vector.load %arg2[%c34, %c0_89] : memref<98x256xf32, #tpu.memory_space<vmem>>, vector<1x256xf32>
      %295 = arith.mulf %294, %292 : vector<1x256xf32>
      %296 = arith.addf %291, %295 : vector<1x256xf32>
      %c83 = arith.constant 83 : index
      %c0_90 = arith.constant 0 : index
      %297 = vector.load %arg2[%c83, %c0_90] : memref<98x256xf32, #tpu.memory_space<vmem>>, vector<1x256xf32>
      %298 = arith.mulf %297, %293 : vector<1x256xf32>
      %299 = arith.addf %296, %298 : vector<1x256xf32>
      %300 = vector.extract_strided_slice %19 {offsets = [0, 29], sizes = [1, 256], strides = [1, 1]} : vector<1x512xf32> to vector<1x256xf32>
      %301 = vector.extract_strided_slice %20 {offsets = [0, 29], sizes = [1, 256], strides = [1, 1]} : vector<1x512xf32> to vector<1x256xf32>
      %c35 = arith.constant 35 : index
      %c0_91 = arith.constant 0 : index
      %302 = vector.load %arg2[%c35, %c0_91] : memref<98x256xf32, #tpu.memory_space<vmem>>, vector<1x256xf32>
      %303 = arith.mulf %302, %300 : vector<1x256xf32>
      %304 = arith.addf %299, %303 : vector<1x256xf32>
      %c84 = arith.constant 84 : index
      %c0_92 = arith.constant 0 : index
      %305 = vector.load %arg2[%c84, %c0_92] : memref<98x256xf32, #tpu.memory_space<vmem>>, vector<1x256xf32>
      %306 = arith.mulf %305, %301 : vector<1x256xf32>
      %307 = arith.addf %304, %306 : vector<1x256xf32>
      %308 = vector.extract_strided_slice %19 {offsets = [0, 30], sizes = [1, 256], strides = [1, 1]} : vector<1x512xf32> to vector<1x256xf32>
      %309 = vector.extract_strided_slice %20 {offsets = [0, 30], sizes = [1, 256], strides = [1, 1]} : vector<1x512xf32> to vector<1x256xf32>
      %c36 = arith.constant 36 : index
      %c0_93 = arith.constant 0 : index
      %310 = vector.load %arg2[%c36, %c0_93] : memref<98x256xf32, #tpu.memory_space<vmem>>, vector<1x256xf32>
      %311 = arith.mulf %310, %308 : vector<1x256xf32>
      %312 = arith.addf %307, %311 : vector<1x256xf32>
      %c85 = arith.constant 85 : index
      %c0_94 = arith.constant 0 : index
      %313 = vector.load %arg2[%c85, %c0_94] : memref<98x256xf32, #tpu.memory_space<vmem>>, vector<1x256xf32>
      %314 = arith.mulf %313, %309 : vector<1x256xf32>
      %315 = arith.addf %312, %314 : vector<1x256xf32>
      %316 = vector.extract_strided_slice %19 {offsets = [0, 31], sizes = [1, 256], strides = [1, 1]} : vector<1x512xf32> to vector<1x256xf32>
      %317 = vector.extract_strided_slice %20 {offsets = [0, 31], sizes = [1, 256], strides = [1, 1]} : vector<1x512xf32> to vector<1x256xf32>
      %c37 = arith.constant 37 : index
      %c0_95 = arith.constant 0 : index
      %318 = vector.load %arg2[%c37, %c0_95] : memref<98x256xf32, #tpu.memory_space<vmem>>, vector<1x256xf32>
      %319 = arith.mulf %318, %316 : vector<1x256xf32>
      %320 = arith.addf %315, %319 : vector<1x256xf32>
      %c86 = arith.constant 86 : index
      %c0_96 = arith.constant 0 : index
      %321 = vector.load %arg2[%c86, %c0_96] : memref<98x256xf32, #tpu.memory_space<vmem>>, vector<1x256xf32>
      %322 = arith.mulf %321, %317 : vector<1x256xf32>
      %323 = arith.addf %320, %322 : vector<1x256xf32>
      %324 = vector.extract_strided_slice %19 {offsets = [0, 32], sizes = [1, 256], strides = [1, 1]} : vector<1x512xf32> to vector<1x256xf32>
      %325 = vector.extract_strided_slice %20 {offsets = [0, 32], sizes = [1, 256], strides = [1, 1]} : vector<1x512xf32> to vector<1x256xf32>
      %c38 = arith.constant 38 : index
      %c0_97 = arith.constant 0 : index
      %326 = vector.load %arg2[%c38, %c0_97] : memref<98x256xf32, #tpu.memory_space<vmem>>, vector<1x256xf32>
      %327 = arith.mulf %326, %324 : vector<1x256xf32>
      %328 = arith.addf %323, %327 : vector<1x256xf32>
      %c87 = arith.constant 87 : index
      %c0_98 = arith.constant 0 : index
      %329 = vector.load %arg2[%c87, %c0_98] : memref<98x256xf32, #tpu.memory_space<vmem>>, vector<1x256xf32>
      %330 = arith.mulf %329, %325 : vector<1x256xf32>
      %331 = arith.addf %328, %330 : vector<1x256xf32>
      %332 = vector.extract_strided_slice %19 {offsets = [0, 33], sizes = [1, 256], strides = [1, 1]} : vector<1x512xf32> to vector<1x256xf32>
      %333 = vector.extract_strided_slice %20 {offsets = [0, 33], sizes = [1, 256], strides = [1, 1]} : vector<1x512xf32> to vector<1x256xf32>
      %c39 = arith.constant 39 : index
      %c0_99 = arith.constant 0 : index
      %334 = vector.load %arg2[%c39, %c0_99] : memref<98x256xf32, #tpu.memory_space<vmem>>, vector<1x256xf32>
      %335 = arith.mulf %334, %332 : vector<1x256xf32>
      %336 = arith.addf %331, %335 : vector<1x256xf32>
      %c88 = arith.constant 88 : index
      %c0_100 = arith.constant 0 : index
      %337 = vector.load %arg2[%c88, %c0_100] : memref<98x256xf32, #tpu.memory_space<vmem>>, vector<1x256xf32>
      %338 = arith.mulf %337, %333 : vector<1x256xf32>
      %339 = arith.addf %336, %338 : vector<1x256xf32>
      %340 = vector.extract_strided_slice %19 {offsets = [0, 34], sizes = [1, 256], strides = [1, 1]} : vector<1x512xf32> to vector<1x256xf32>
      %341 = vector.extract_strided_slice %20 {offsets = [0, 34], sizes = [1, 256], strides = [1, 1]} : vector<1x512xf32> to vector<1x256xf32>
      %c40 = arith.constant 40 : index
      %c0_101 = arith.constant 0 : index
      %342 = vector.load %arg2[%c40, %c0_101] : memref<98x256xf32, #tpu.memory_space<vmem>>, vector<1x256xf32>
      %343 = arith.mulf %342, %340 : vector<1x256xf32>
      %344 = arith.addf %339, %343 : vector<1x256xf32>
      %c89 = arith.constant 89 : index
      %c0_102 = arith.constant 0 : index
      %345 = vector.load %arg2[%c89, %c0_102] : memref<98x256xf32, #tpu.memory_space<vmem>>, vector<1x256xf32>
      %346 = arith.mulf %345, %341 : vector<1x256xf32>
      %347 = arith.addf %344, %346 : vector<1x256xf32>
      %348 = vector.extract_strided_slice %19 {offsets = [0, 35], sizes = [1, 256], strides = [1, 1]} : vector<1x512xf32> to vector<1x256xf32>
      %349 = vector.extract_strided_slice %20 {offsets = [0, 35], sizes = [1, 256], strides = [1, 1]} : vector<1x512xf32> to vector<1x256xf32>
      %c41 = arith.constant 41 : index
      %c0_103 = arith.constant 0 : index
      %350 = vector.load %arg2[%c41, %c0_103] : memref<98x256xf32, #tpu.memory_space<vmem>>, vector<1x256xf32>
      %351 = arith.mulf %350, %348 : vector<1x256xf32>
      %352 = arith.addf %347, %351 : vector<1x256xf32>
      %c90 = arith.constant 90 : index
      %c0_104 = arith.constant 0 : index
      %353 = vector.load %arg2[%c90, %c0_104] : memref<98x256xf32, #tpu.memory_space<vmem>>, vector<1x256xf32>
      %354 = arith.mulf %353, %349 : vector<1x256xf32>
      %355 = arith.addf %352, %354 : vector<1x256xf32>
      %356 = vector.extract_strided_slice %19 {offsets = [0, 45], sizes = [1, 256], strides = [1, 1]} : vector<1x512xf32> to vector<1x256xf32>
      %357 = vector.extract_strided_slice %20 {offsets = [0, 45], sizes = [1, 256], strides = [1, 1]} : vector<1x512xf32> to vector<1x256xf32>
      %c42 = arith.constant 42 : index
      %c0_105 = arith.constant 0 : index
      %358 = vector.load %arg2[%c42, %c0_105] : memref<98x256xf32, #tpu.memory_space<vmem>>, vector<1x256xf32>
      %359 = arith.mulf %358, %356 : vector<1x256xf32>
      %360 = arith.addf %355, %359 : vector<1x256xf32>
      %c91 = arith.constant 91 : index
      %c0_106 = arith.constant 0 : index
      %361 = vector.load %arg2[%c91, %c0_106] : memref<98x256xf32, #tpu.memory_space<vmem>>, vector<1x256xf32>
      %362 = arith.mulf %361, %357 : vector<1x256xf32>
      %363 = arith.addf %360, %362 : vector<1x256xf32>
      %364 = vector.extract_strided_slice %19 {offsets = [0, 46], sizes = [1, 256], strides = [1, 1]} : vector<1x512xf32> to vector<1x256xf32>
      %365 = vector.extract_strided_slice %20 {offsets = [0, 46], sizes = [1, 256], strides = [1, 1]} : vector<1x512xf32> to vector<1x256xf32>
      %c43 = arith.constant 43 : index
      %c0_107 = arith.constant 0 : index
      %366 = vector.load %arg2[%c43, %c0_107] : memref<98x256xf32, #tpu.memory_space<vmem>>, vector<1x256xf32>
      %367 = arith.mulf %366, %364 : vector<1x256xf32>
      %368 = arith.addf %363, %367 : vector<1x256xf32>
      %c92 = arith.constant 92 : index
      %c0_108 = arith.constant 0 : index
      %369 = vector.load %arg2[%c92, %c0_108] : memref<98x256xf32, #tpu.memory_space<vmem>>, vector<1x256xf32>
      %370 = arith.mulf %369, %365 : vector<1x256xf32>
      %371 = arith.addf %368, %370 : vector<1x256xf32>
      %372 = vector.extract_strided_slice %19 {offsets = [0, 47], sizes = [1, 256], strides = [1, 1]} : vector<1x512xf32> to vector<1x256xf32>
      %373 = vector.extract_strided_slice %20 {offsets = [0, 47], sizes = [1, 256], strides = [1, 1]} : vector<1x512xf32> to vector<1x256xf32>
      %c44 = arith.constant 44 : index
      %c0_109 = arith.constant 0 : index
      %374 = vector.load %arg2[%c44, %c0_109] : memref<98x256xf32, #tpu.memory_space<vmem>>, vector<1x256xf32>
      %375 = arith.mulf %374, %372 : vector<1x256xf32>
      %376 = arith.addf %371, %375 : vector<1x256xf32>
      %c93 = arith.constant 93 : index
      %c0_110 = arith.constant 0 : index
      %377 = vector.load %arg2[%c93, %c0_110] : memref<98x256xf32, #tpu.memory_space<vmem>>, vector<1x256xf32>
      %378 = arith.mulf %377, %373 : vector<1x256xf32>
      %379 = arith.addf %376, %378 : vector<1x256xf32>
      %380 = vector.extract_strided_slice %19 {offsets = [0, 48], sizes = [1, 256], strides = [1, 1]} : vector<1x512xf32> to vector<1x256xf32>
      %381 = vector.extract_strided_slice %20 {offsets = [0, 48], sizes = [1, 256], strides = [1, 1]} : vector<1x512xf32> to vector<1x256xf32>
      %c45 = arith.constant 45 : index
      %c0_111 = arith.constant 0 : index
      %382 = vector.load %arg2[%c45, %c0_111] : memref<98x256xf32, #tpu.memory_space<vmem>>, vector<1x256xf32>
      %383 = arith.mulf %382, %380 : vector<1x256xf32>
      %384 = arith.addf %379, %383 : vector<1x256xf32>
      %c94 = arith.constant 94 : index
      %c0_112 = arith.constant 0 : index
      %385 = vector.load %arg2[%c94, %c0_112] : memref<98x256xf32, #tpu.memory_space<vmem>>, vector<1x256xf32>
      %386 = arith.mulf %385, %381 : vector<1x256xf32>
      %387 = arith.addf %384, %386 : vector<1x256xf32>
      %388 = vector.extract_strided_slice %19 {offsets = [0, 49], sizes = [1, 256], strides = [1, 1]} : vector<1x512xf32> to vector<1x256xf32>
      %389 = vector.extract_strided_slice %20 {offsets = [0, 49], sizes = [1, 256], strides = [1, 1]} : vector<1x512xf32> to vector<1x256xf32>
      %c46 = arith.constant 46 : index
      %c0_113 = arith.constant 0 : index
      %390 = vector.load %arg2[%c46, %c0_113] : memref<98x256xf32, #tpu.memory_space<vmem>>, vector<1x256xf32>
      %391 = arith.mulf %390, %388 : vector<1x256xf32>
      %392 = arith.addf %387, %391 : vector<1x256xf32>
      %c95 = arith.constant 95 : index
      %c0_114 = arith.constant 0 : index
      %393 = vector.load %arg2[%c95, %c0_114] : memref<98x256xf32, #tpu.memory_space<vmem>>, vector<1x256xf32>
      %394 = arith.mulf %393, %389 : vector<1x256xf32>
      %395 = arith.addf %392, %394 : vector<1x256xf32>
      %396 = vector.extract_strided_slice %19 {offsets = [0, 50], sizes = [1, 256], strides = [1, 1]} : vector<1x512xf32> to vector<1x256xf32>
      %397 = vector.extract_strided_slice %20 {offsets = [0, 50], sizes = [1, 256], strides = [1, 1]} : vector<1x512xf32> to vector<1x256xf32>
      %c47 = arith.constant 47 : index
      %c0_115 = arith.constant 0 : index
      %398 = vector.load %arg2[%c47, %c0_115] : memref<98x256xf32, #tpu.memory_space<vmem>>, vector<1x256xf32>
      %399 = arith.mulf %398, %396 : vector<1x256xf32>
      %400 = arith.addf %395, %399 : vector<1x256xf32>
      %c96 = arith.constant 96 : index
      %c0_116 = arith.constant 0 : index
      %401 = vector.load %arg2[%c96, %c0_116] : memref<98x256xf32, #tpu.memory_space<vmem>>, vector<1x256xf32>
      %402 = arith.mulf %401, %397 : vector<1x256xf32>
      %403 = arith.addf %400, %402 : vector<1x256xf32>
      %404 = vector.extract_strided_slice %19 {offsets = [0, 51], sizes = [1, 256], strides = [1, 1]} : vector<1x512xf32> to vector<1x256xf32>
      %405 = vector.extract_strided_slice %20 {offsets = [0, 51], sizes = [1, 256], strides = [1, 1]} : vector<1x512xf32> to vector<1x256xf32>
      %c48 = arith.constant 48 : index
      %c0_117 = arith.constant 0 : index
      %406 = vector.load %arg2[%c48, %c0_117] : memref<98x256xf32, #tpu.memory_space<vmem>>, vector<1x256xf32>
      %407 = arith.mulf %406, %404 : vector<1x256xf32>
      %408 = arith.addf %403, %407 : vector<1x256xf32>
      %c97 = arith.constant 97 : index
      %c0_118 = arith.constant 0 : index
      %409 = vector.load %arg2[%c97, %c0_118] : memref<98x256xf32, #tpu.memory_space<vmem>>, vector<1x256xf32>
      %410 = arith.mulf %409, %405 : vector<1x256xf32>
      %411 = arith.addf %408, %410 : vector<1x256xf32>
      %412 = arith.negf %411 : vector<1x256xf32>
      %413 = math.exp %412 : vector<1x256xf32>
      %cst_119 = arith.constant 1.000000e+00 : f32
      %414 = vector.broadcast %cst_119 : f32 to vector<1x256xf32>
      %415 = arith.addf %414, %413 : vector<1x256xf32>
      %416 = arith.divf %414, %415 : vector<1x256xf32>
      %c0_120 = arith.constant 0 : index
      %c0_121 = arith.constant 0 : index
      %c0_122 = arith.constant 0 : index
      %417 = vector.load %arg4[%c0_120, %c0_121, %c0_122] : memref<1x1x256xf32, #tpu.memory_space<vmem>>, vector<1x1x256xf32>
      %418 = vector.shape_cast %417 : vector<1x1x256xf32> to vector<1x256xf32>
      %419 = vector.shape_cast %416 : vector<1x256xf32> to vector<1x1x256xf32>
      tpu.vector_store %arg4[%c0_120, %c0_121, %c0_122], %419 {strides = array<i32>} : memref<1x1x256xf32, #tpu.memory_space<vmem>>, vector<1x1x256xf32>,
    } else {
    }
    return
  }
  func.func @transform_0(%arg0: i32, %arg1: i32) -> (i32, i32) {
    %c0_i32 = arith.constant 0 : i32
    %c0_i32_0 = arith.constant 0 : i32
    %c0_i32_1 = arith.constant 0 : i32
    return %c0_i32, %c0_i32_0 : i32, i32
  }
  func.func @transform_1(%arg0: i32, %arg1: i32) -> (i32, i32, i32) {
    %c0_i32 = arith.constant 0 : i32
    %c0_i32_0 = arith.constant 0 : i32
    return %arg0, %arg1, %c0_i32 : i32, i32, i32
  }
  func.func @transform_2(%arg0: i32, %arg1: i32) -> (i32, i32, i32) {
    %c0_i32 = arith.constant 0 : i32
    %c0_i32_0 = arith.constant 0 : i32
    %c0_i32_1 = arith.constant 0 : i32
    return %arg0, %c0_i32, %c0_i32_0 : i32, i32, i32
  }
}

</mosaic_0001>

<bundles_post_ra>
// kernel: tpu_custom_call.1
= control target key start
LH: loop header
LB: loop body
LE: loop exit
PB: predicated region body
PF: predicated region fallthrough
CT: control target
= control target key end

     0   :  { %7 = vsyncpa [#allocation5], 0  ;;  %s2181_s0 = inlined_call_operand.hbm [shape: f32[98,256], index: 0, kind: input, shape index: {}]   ;;  %s2182_s1 = inlined_call_operand.hbm [shape: f32[2,4,256], index: 1, kind: input, shape index: {}]   ;;  %s2183_s2 = inlined_call_operand.hbm [shape: f32[2,1,256], index: 2, kind: output, shape index: {}]  }
   0x1   :  { %8 = vsyncpa [#allocation8], 0 }
   0x2   :  { %10 = vsyncpa [#allocation8 + $0x1], 0 }
   0x3   :  { %11 = vsyncpa [#allocation6], 0 }
   0x4   :  { %13 = vsyncpa [#allocation6 + $0x1], 0  ;;  %s1707_s9 = smov 0   ;;  %s1709_s10 = smov 0  }
   0x5   :  { %s1711_s11 = smov 0   ;;  %s1713_s12 = smov 0  }
   0x6   :  { %s1715_s13 = smov 0   ;;  %s1717_s14 = smov 0  }
   0x7 LB: > { %s1344_s15 = sadd.s32 4294967295, %s1637_s14   ;;  %p1346_p0 = scmp.ge.s32.totalorder %s1637_s14, 1  ;;  %s1637_s14 = sphi %s1717_s14, %s19_s14   ;;  %s1633_s13 = sphi %s1715_s13, %s2196_s13   ;;  %s1629_s12 = sphi %s1713_s12, %s2195_s12   ;;  %s1625_s11 = sphi %s1711_s11, %s2194_s11   ;;  %s1621_s10 = sphi %s1709_s10, %s2193_s10   ;;  %s1617_s9 = sphi %s1707_s9, %s2192_s9  }
   0x8   : > { %p1739_p1 = scmp.eq.s32.totalorder %s1344_s15, 0  ;;  %p111_p2 = scmp.lt.s32.totalorder %s1637_s14, 3 }
   0x9   : > { %s122_s19 = sshll.u32 %s2181_s0, 4  ;;  %s1639_s21 = smov [#allocation4]   ;;  %s123_s19 = int_to_ptr.hbm [resolvable:$true] %s122_s19 }
   0xa   : > { %p1747_p3 = pnand %p1346_p0, %p111_p2  ;;  %s124_s22 = sshll.u32 %s1639_s21, 4  ;;  %s125_s22 = int_to_ptr.vmem [resolvable:$true] %s124_s22 }
   0xb   : > { %p1348_p6 = scmp.ge.s32.totalorder %s1637_s14, 2  ;;  %s1640_s23 = smov 256  }
   0xc   : > { %p1370_p4 = pneg %p1747_p3  ;;  %s1641_s24 = smov 16  }
   0xd   : > { %s1345_s25 = sadd.s32 4294967294, %s1637_s14   ;;  %s31_s26 = sadd.s32 1, %s1633_s13 }
   0xe   : > { %p1371_p5 = pnand %p1370_p4, %p1739_p1  ;;  %s61_s27 = sadd.s32 1, %s1625_s11 }
   0xf   : > { %p33_p7 = scmp.ge.s32.totalorder %s31_s26, 2  ;;  %p68_p8 = scmp.ne.s32.totalorder %s1625_s11, %s1621_s10 }
  0x10   : > { %1373 = dma.hbm_to_vmem [thread:$0]  (!%p1371_p5), %s123_s19, 3328, %s125_s22, [#allocation5], %s1640_s23, %s1640_s23, %s1641_s24  }
  0x11   : > { %p69_p9 = scmp.eq.s32.totalorder %s1637_s14, 0  ;;  %p74_p10 = scmp.ne.s32.totalorder %s1621_s10, %s1617_s9 }
  0x12   : > { %s2198_s26 = smov (%p33_p7, %s31_s26), 0  ;;  %p98_p13 = scmp.eq.s32.totalorder %s1344_s15, 1 }
  0x13   : > { %p1766_p11 = por %p69_p9, %p68_p8  ;;  %p1772_p12 = por %p1739_p1, %p74_p10 }
  0x14   : > { %s56_s30 = ssub.s32 %s1633_s13, %s2198_s26  ;;  %p104_p2 = scmp.eq.s32.totalorder %s1345_s25, 1 }
  0x15   : > { %p59_p0 = scmp.eq.s32.totalorder %s56_s30, 0  ;;  %p1778_p4 = por %p98_p13, %p68_p8 }
  0x16   : > { %p1383_p5 = scmp.lt.s32.totalorder %s1637_s14, 2  ;;  %p1786_p7 = por %p104_p2, %p74_p10 }
  0x17   : > { %s1784_s4 = scalar_select %p59_p0, %s1625_s11, %s61_s27  }
  0x18   : > { %s138_s6 = sand.u32 1, %s1625_s11   ;;  %s1361_s8 = sshll.u32 %s1633_s13, 3 }
  0x19   : > { %s1349_s7 = sshll.u32 %s138_s6, 3  ;;  %s149_s15 = scalar_lea.hbm %s2182_s1, %s1361_s8 }
  0x1a   : > { %s142_s19 = scalar_lea.vmem [#allocation7], %s1349_s7  ;;  %s151_s22 = sshll.u32 %s149_s15, 4  ;;  %s152_s22 = int_to_ptr.hbm [resolvable:$true] %s151_s22 }
  0x1b   : > { %s153_s21 = sshll.u32 %s142_s19, 4  ;;  %p1375_p8 = pnand %p1383_p5, %p1766_p11  ;;  %s154_s21 = int_to_ptr.vmem [resolvable:$true] %s153_s21 }
  0x1c   : > { %s139_s23 = scalar_lea.sflag [#allocation8], %s138_s6  ;;  %162 = sbr.rel (%p1747_p3) target bundleno = 486 (0x1e6), region = 28 }
  0x1d   : > { %1377 = dma.hbm_to_vmem [thread:$0]  (!%p1375_p8), %s152_s22, 128, %s154_s21, %s139_s23  }
  0x21   : > { %1604 = dma.done.wait (%p1739_p1), [#allocation5], 3328  }
  0x22   : > { %1606 = vsyncadd (%p1739_p1), [#allocation5], 4294963968  ;;  %s1804_s24 = sand.u32 1, %s1621_s10  }
  0x23   : > { %s1354_s25 = sshll.u32 %s1804_s24, 3  ;;  %s170_s27 = scalar_lea.sflag [#allocation8], %s1804_s24 }
  0x24   : > { %s173_s28 = scalar_lea.vmem [#allocation7], %s1354_s25 }
  0x25   : > { %1608 = dma.done.wait (%p1772_p12), %s170_s27, 128  }
  0x26   : > { %1610 = vsyncadd (%p1772_p12), %s170_s27, 4294967168  ;;  %v199_v0 = vlaneseq  ;;  %v1642_v2 = vmov 0.0   ;;  %v1643_v3 = vmov -inf   ;;  %v205_v4 = vld [vmem:[%s173_s28] sm:$0xff]  ;;  %vm213_vm1 = vcmask 1043456   ;;  %s1644_s16 = smov 50  }
  0x27   : > { %208 = vst [vmem:[#allocation1] ss:$2 sm:$0xff] %v205_v4  ;;  %vm231_vm2 = vcmask 1040384   ;;  %vm283_vm3 = vcmask 1041408   ;;  %s1645_s20 = smov 51   ;;  %s1646_s29 = smov 49  }
  0x28   : > { %vm1812_vm0 = vcmp.lt.s32.totalorder %v199_v0, 256  ;;  %s1647_s30 = smov 46   ;;  %s1648_s6 = smov 48   ;;  %vm288_vm4 = vcmask 416768   ;;  %vm311_vm5 = vcmask 408576   ;;  %vm330_vm6 = vcmask 400384  }
  0x29   : > { %203 = vst.msk [vmem:[#allocation2] sm:$0x3] %vm1812_vm0, %v1642_v2  ;;  %s1649_s7 = smov 47   ;;  %s1650_s8 = smov 34   ;;  %vm349_vm7 = vcmask 392192   ;;  %vm368_vm8 = vcmask 384000  }
  0x2a   : > { %204 = vst.msk [vmem:[#allocation3] sm:$0x3] %vm1812_vm0, %v1643_v3  ;;  %s1651_s17 = smov 45   ;;  %s1652_s18 = smov 35   ;;  %vm387_vm9 = vcmask 375808   ;;  %vm406_vm10 = vcmask 367616  }
  0x2b   : > { %s1653_s15 = smov 31   ;;  %s1654_s19 = smov 33   ;;  %vm425_vm11 = vcmask 285696   ;;  %vm444_vm12 = vcmask 277504   ;;  %vm463_vm13 = vcmask 269312   ;;  %vm482_vm14 = vcmask 261120  }
  0x2c   : > { %s1655_s21 = smov 32   ;;  %s1656_s22 = smov 30   ;;  %vm501_vm15 = vcmask 252928  }
  0x2d   : > { %s1657_s23 = smov 29   ;;  %s1658_s25 = smov 19  }
  0x2e   : > { %v209_v5 = vld.sshfl [vmem:[#allocation1] sm:$0xff pattern:$0x75316420]  ;;  %v210_v6 = vld.sshfl [vmem:[#allocation1 + $0x8] sm:$0xff pattern:$0x75316420] }
  0x2f   : > { %v214_v7 = vsel %vm213_vm1, %v209_v5, 0.0  ;;  %v221_v8 = vsel %vm213_vm1, %v210_v6, 0.0  ;;  %241 = vst [vmem:[#allocation1] ss:$2 sm:$0xff] %v205_v4  ;;  %s1659_s27 = smov 18   ;;  %s1660_s28 = smov 17  }
  0x30   : > { %v215_v9 = vrot.slane %v214_v7, 4  ;;  %v222_v10 = vrot.slane %v221_v8, 4  ;;  %v206_v29 = vld [vmem:[#allocation2] sm:$0x3] }
  0x31   : > { %v240_v41 = vld [vmem:[#allocation3] sm:$0x3] }
  0x32   : > { %v216_v11 = vadd.f32 %v215_v9, %v214_v7  ;;  %v223_v12 = vadd.f32 %v222_v10, %v221_v8 }
  0x34   : > { %v217_v13 = vrot.slane %v216_v11, 2  ;;  %v224_v14 = vrot.slane %v223_v12, 2 }
  0x36   : > { %v218_v15 = vadd.f32 %v217_v13, %v216_v11  ;;  %v225_v16 = vadd.f32 %v224_v14, %v223_v12  ;;  %v242_v17 = vld.sshfl [vmem:[#allocation1] sm:$0xff pattern:$0x75316420]  ;;  %v243_v18 = vld.sshfl [vmem:[#allocation1 + $0x8] sm:$0xff pattern:$0x75316420] }
  0x37   : > { %v246_v19 = vsel %vm213_vm1, %v242_v17, -inf  ;;  %v253_v20 = vsel %vm213_vm1, %v243_v18, -inf  ;;  %vm520_vm1 = vcmask 244736  }
  0x38   : > { %v219_v21 = vrot.slane %v218_v15, 1  ;;  %v226_v22 = vrot.slane %v225_v16, 1  ;;  %v247_v23 = vrot.slane %v246_v19, 4  ;;  %v254_v24 = vrot.slane %v253_v20, 4 }
  0x3a   : > { %v220_v25 = vadd.f32 %v219_v21, %v218_v15  ;;  %v227_v26 = vadd.f32 %v226_v22, %v225_v16  ;;  %v248_v27 = vmax.f32 %v246_v19, %v247_v23  ;;  %v255_v28 = vmax.f32 %v253_v20, %v254_v24  ;;  %v279_v22 = vld [vmem:[#allocation4] ss:$8 sm:$0x3] }
  0x3c   : > { %v230_v30 = vrot.slane %v227_v26, 7  ;;  %v249_v31 = vrot.slane %v248_v27, 2  ;;  %v256_v32 = vrot.slane %v255_v28, 2 }
  0x3e   : > { %v232_v33 = vsel %vm231_vm2, %v220_v25, %v230_v30  ;;  %v250_v34 = vmax.f32 %v248_v27, %v249_v31  ;;  %v257_v35 = vmax.f32 %v255_v28, %v256_v32  ;;  %v294_v27 = vld [vmem:[#allocation4 + $0x61] ss:$8 sm:$0x3] }
  0x3f   : > { %v234_v36 = vadd.f32 %v232_v33, %v206_v29  ;;  %v307_v30 = vld [vmem:[#allocation4 + $0x1] ss:$8 sm:$0x3] }
  0x40   : > { %v251_v37 = vrot.slane %v250_v34, 1  ;;  %v258_v38 = vrot.slane %v257_v35, 1 }
  0x41   : > { %239 = vst.msk [vmem:[#allocation2] sm:$0x3] %vm1812_vm0, %v234_v36  ;;  %v317_v36 = vld [vmem:[#allocation4 + $0x62] ss:$8 sm:$0x3] }
  0x42   : > { %v252_v39 = vmax.f32 %v250_v34, %v251_v37  ;;  %v259_v40 = vmax.f32 %v257_v35, %v258_v38 }
  0x44   : > { %v262_v42 = vrot.slane %v259_v40, 7 }
  0x46   : > { %v263_v43 = vsel %vm231_vm2, %v252_v39, %v262_v42 }
  0x47   : > { %v265_v44 = vmax.f32 %v240_v41, %v263_v43  ;;  %v326_v41 = vld [vmem:[#allocation4 + $0x2] ss:$8 sm:$0x3] }
  0x48   : > { %v270_v45 = vld [vmem:[#allocation2] sm:$0x3] }
  0x49   : > { %266 = vst.msk [vmem:[#allocation3] sm:$0x3] %vm1812_vm0, %v265_v44  ;;  %v1830_v46 = vmul.f32 0.25, %v270_v45 }
  0x4b   : > { %v1833_v47 = vperm.slane %v1830_v46, 0  ;;  %v1836_v48 = vperm.slane %v1830_v46, 1 }
  0x4d   : > { %v280_v49 = vrot.slane %v1833_v47, 7  ;;  %v281_v50 = vrot.slane %v1836_v48, 6  ;;  %v753_v4 = vrot.slane %v1836_v48, 7  ;;  %v754_v6 = vrot.slane %v1833_v47, 6 }
  0x4f   : > { %v282_v51 = vsel %vm231_vm2, %v1836_v48, %v280_v49  ;;  %v755_v10 = vsel %vm231_vm2, %v1833_v47, %v753_v4  ;;  %v336_v49 = vld [vmem:[#allocation4 + $0x63] ss:$8 sm:$0x3] }
  0x50   : > { %v1843_v52 = vsel %vm283_vm3, %v282_v51, %v281_v50  ;;  %v1854_v53 = vld [vmem:[#allocation3] sm:$0x3]  ;;  %v1912_v13 = vsel %vm283_vm3, %v755_v10, %v754_v6 }
  0x51   : > { %308 = vrot.lane.b32.xlu1 %v1843_v52, %s1644_s16  ;;  %285 = vrot.lane.b32.xlu0 %v1843_v52, %s1645_s20  ;;  %v1860_v54 = vperm.slane %v1854_v53, 0  ;;  %v1863_v55 = vperm.slane %v1854_v53, 1 }
  0x52   : > { %327 = vrot.lane.b32.xlu2 %v1843_v52, %s1646_s29 }
  0x53   : > { %v295_v56 = vrot.slane %v1860_v54, 7  ;;  %v296_v57 = vrot.slane %v1863_v55, 6  ;;  %v767_v3 = vrot.slane %v1863_v55, 7  ;;  %v768_v5 = vrot.slane %v1860_v54, 6 }
  0x55   : > { %v297_v58 = vsel %vm231_vm2, %v1863_v55, %v295_v56  ;;  %v769_v9 = vsel %vm231_vm2, %v1860_v54, %v767_v3  ;;  %v345_v56 = vld [vmem:[#allocation4 + $0x3] ss:$8 sm:$0x3]  ;;  %vm539_vm2 = vcmask 236544  }
  0x56   : > { %v298_v59 = vsel %vm283_vm3, %v297_v58, %v296_v57  ;;  %v1909_v12 = vsel %vm283_vm3, %v769_v9, %v768_v5  ;;  %v364_v9 = vld [vmem:[#allocation4 + $0x4] ss:$8 sm:$0x3]  ;;  %vm558_vm3 = vcmask 154624  }
  0x59   : > { %384 = vrot.lane.b32.xlu1 %v1843_v52, %s1647_s30  ;;  %346 = vrot.lane.b32.xlu0 %v1843_v52, %s1648_s6 }
  0x5a   : > { %365 = vrot.lane.b32.xlu2 %v1843_v52, %s1649_s7 }
  0x61   : > { %441 = vrot.lane.b32.xlu1 %v1843_v52, %s1650_s8  ;;  %403 = vrot.lane.b32.xlu0 %v1843_v52, %s1651_s17 }
  0x62   : > { %422 = vrot.lane.b32.xlu2 %v1843_v52, %s1652_s18 }
  0x69   : > { %498 = vrot.lane.b32.xlu1 %v1843_v52, %s1653_s15  ;;  %460 = vrot.lane.b32.xlu0 %v1843_v52, %s1654_s19 }
  0x6a   : > { %479 = vrot.lane.b32.xlu2 %v1843_v52, %s1655_s21 }
  0x71   : > { %318 = vrot.lane.b32.xlu1 %v298_v59, %s1644_s16  ;;  %299 = vrot.lane.b32.xlu0 %v298_v59, %s1645_s20  ;;  %s1661_s16 = smov 16   ;;  %s1662_s20 = smov 15  }
  0x72   : > { %337 = vrot.lane.b32.xlu2 %v298_v59, %s1646_s29  ;;  %s1663_s29 = smov 14  }
  0x79   : > { %356 = vrot.lane.b32.xlu1 %v298_v59, %s1648_s6  ;;  %375 = vrot.lane.b32.xlu0 %v298_v59, %s1649_s7  ;;  %s1665_s6 = smov 3   ;;  %s1666_s7 = smov 2  }
  0x7a   : > { %394 = vrot.lane.b32.xlu2 %v298_v59, %s1647_s30  ;;  %s1664_s30 = smov 13  }
  0x81   : > { %413 = vrot.lane.b32.xlu1 %v298_v59, %s1651_s17  ;;  %432 = vrot.lane.b32.xlu0 %v298_v59, %s1652_s18  ;;  %s1668_s17 = smov 127   ;;  %s1669_s18 = smov 126  }
  0x82   : > { %451 = vrot.lane.b32.xlu2 %v298_v59, %s1650_s8  ;;  %s1667_s8 = smov 1  }
  0x89   : > { %470 = vrot.lane.b32.xlu1 %v298_v59, %s1654_s19  ;;  %489 = vrot.lane.b32.xlu0 %v298_v59, %s1655_s21  ;;  %s1671_s19 = smov 115   ;;  %s1672_s21 = smov 114  }
  0x8a   : > { %508 = vrot.lane.b32.xlu2 %v298_v59, %s1653_s15  ;;  %s1670_s15 = smov 125  }
  0x91   : > { %527 = vrot.lane.b32.xlu1 %v298_v59, %s1656_s22  ;;  %517 = vrot.lane.b32.xlu0 %v1843_v52, %s1656_s22  ;;  %s1673_s22 = smov 113  }
  0x92   : > { %536 = vrot.lane.b32.xlu2 %v1843_v52, %s1657_s23 }
  0x99   : > { %555 = vrot.lane.b32.xlu1 %v1843_v52, %s1658_s25  ;;  %546 = vrot.lane.b32.xlu0 %v298_v59, %s1657_s23  ;;  %s1674_s23 = smov 112  }
  0x9a   : > { %565 = vrot.lane.b32.xlu2 %v298_v59, %s1658_s25  ;;  %s1675_s25 = smov 111  }
  0xa1   : > { %584 = vrot.lane.b32.xlu1 %v298_v59, %s1659_s27  ;;  %574 = vrot.lane.b32.xlu0 %v1843_v52, %s1659_s27  ;;  %s1676_s27 = smov 110  }
  0xa2   : > { %593 = vrot.lane.b32.xlu2 %v1843_v52, %s1660_s28 }
  0xa9   : > { %612 = vrot.lane.b32.xlu1 %v1843_v52, %s1661_s16  ;;  %603 = vrot.lane.b32.xlu0 %v298_v59, %s1660_s28  ;;  %s1677_s28 = smov 109  }
  0xaa   : > { %622 = vrot.lane.b32.xlu2 %v298_v59, %s1661_s16  ;;  %s1678_s16 = smov 99  }
  0xac   : > { %v1882_v60 = vpop.permute.xlu2 %327 }
  0xad   : > { %v329_v32 = vrot.slane %v1882_v60, 1 }
  0xaf   : > { %v331_v42 = vsel %vm330_vm6, %v1882_v60, %v329_v32 }
  0xb0   : > { %v333_v54 = vmul.f32 %v331_v42, %v326_v41 }
  0xb1   : > { %641 = vrot.lane.b32.xlu1 %v298_v59, %s1662_s20  ;;  %631 = vrot.lane.b32.xlu0 %v1843_v52, %s1662_s20  ;;  %s1679_s20 = smov 98  }
  0xb2   : > { %650 = vrot.lane.b32.xlu2 %v1843_v52, %s1663_s29 }
  0xb4   : > { %v1886_v61 = vpop.permute.xlu2 %365 }
  0xb5   : > { %v367_v58 = vrot.slane %v1886_v61, 1 }
  0xb9   : > { %669 = vrot.lane.b32.xlu1 %v1843_v52, %s1664_s30  ;;  %660 = vrot.lane.b32.xlu0 %v298_v59, %s1663_s29  ;;  %s1680_s29 = smov 97  }
  0xba   : > { %679 = vrot.lane.b32.xlu2 %v298_v59, %s1664_s30  ;;  %s1681_s30 = smov 96  }
  0xbc   : > { %v1889_v62 = vpop.permute.xlu2 %422 }
  0xc1   : > { %698 = vrot.lane.b32.xlu1 %v298_v59, %s1665_s6  ;;  %688 = vrot.lane.b32.xlu0 %v1843_v52, %s1665_s6  ;;  %s1682_s6 = smov 95  }
  0xc2   : > { %707 = vrot.lane.b32.xlu2 %v1843_v52, %s1666_s7 }
  0xc3   : > { %v309_v63 = vpop.permute.xlu1 %308  ;;  %v286_v0 = vpop.permute.xlu0 %285 }
  0xc4   : > { %v1893_v2 = vpop.permute.xlu2 %479  ;;  %v287_v20 = vrot.slane %v286_v0, 1  ;;  %v310_v21 = vrot.slane %v309_v63, 1 }
  0xc6   : > { %v289_v25 = vsel %vm288_vm4, %v286_v0, %v287_v20  ;;  %v312_v31 = vsel %vm311_vm5, %v309_v63, %v310_v21  ;;  %v355_v63 = vld [vmem:[#allocation4 + $0x64] ss:$8 sm:$0x3] }
  0xc7   : > { %v291_v34 = vmul.f32 %v289_v25, %v279_v22  ;;  %v314_v39 = vmul.f32 %v312_v31, %v307_v30  ;;  %v374_v22 = vld [vmem:[#allocation4 + $0x65] ss:$8 sm:$0x3] }
  0xc9   : > { %726 = vrot.lane.b32.xlu1 %v1843_v52, %s1667_s8  ;;  %717 = vrot.lane.b32.xlu0 %v298_v59, %s1666_s7  ;;  %s1683_s7 = smov 94  }
  0xca   : > { %736 = vrot.lane.b32.xlu2 %v298_v59, %s1667_s8  ;;  %s1684_s8 = smov 93  }
  0xcb   : > { %v1900_v7 = vpop.permute.xlu1 %384  ;;  %v1902_v8 = vpop.permute.xlu0 %346 }
  0xcc   : > { %v338_v11 = vpop.permute.xlu2 %337  ;;  %v348_v43 = vrot.slane %v1902_v8, 1  ;;  %v386_v6 = vrot.slane %v1900_v7, 1 }
  0xcd   : > { %v339_v38 = vrot.slane %v338_v11, 1 }
  0xce   : > { %v350_v57 = vsel %vm349_vm7, %v1902_v8, %v348_v43  ;;  %v369_v8 = vsel %vm368_vm8, %v1886_v61, %v367_v58  ;;  %v388_v61 = vsel %vm387_vm9, %v1900_v7, %v386_v6  ;;  %v412_v43 = vld [vmem:[#allocation4 + $0x67] ss:$8 sm:$0x3] }
  0xcf   : > { %v340_v50 = vsel %vm330_vm6, %v338_v11, %v339_v38  ;;  %v352_v4 = vmul.f32 %v350_v57, %v345_v56  ;;  %v402_v38 = vld [vmem:[#allocation4 + $0x6] ss:$8 sm:$0x3]  ;;  %v431_v56 = vld [vmem:[#allocation4 + $0x70] ss:$8 sm:$0x3] }
  0xd0   : > { %v342_v60 = vmul.f32 %v340_v50, %v336_v49  ;;  %vm615_vm6 = vcmask 130048  }
  0xd1   : > { %771 = vrot.lane.b32.xlu1 %v1909_v12, %s1668_s17  ;;  %757 = vrot.lane.b32.xlu0 %v1912_v13, %s1668_s17  ;;  %s1685_s17 = smov 83  }
  0xd2   : > { %780 = vrot.lane.b32.xlu2 %v1912_v13, %s1669_s18 }
  0xd3   : > { %v1917_v14 = vpop.permute.xlu1 %441  ;;  %v1919_v15 = vpop.permute.xlu0 %403 }
  0xd4   : > { %v1921_v16 = vpop.permute.xlu2 %394  ;;  %v405_v30 = vrot.slane %v1919_v15, 1  ;;  %v443_v50 = vrot.slane %v1917_v14, 1 }
  0xd6   : > { %v407_v7 = vsel %vm406_vm10, %v1919_v15, %v405_v30  ;;  %v421_v15 = vld [vmem:[#allocation4 + $0x7] ss:$8 sm:$0x3] }
  0xd9   : > { %799 = vrot.lane.b32.xlu1 %v1912_v13, %s1670_s15  ;;  %790 = vrot.lane.b32.xlu0 %v1909_v12, %s1669_s18  ;;  %s1686_s18 = smov 82  }
  0xda   : > { %809 = vrot.lane.b32.xlu2 %v1909_v12, %s1670_s15  ;;  %s1687_s15 = smov 81  }
  0xdb   : > { %v1926_v17 = vpop.permute.xlu1 %498  ;;  %v1928_v18 = vpop.permute.xlu0 %460 }
  0xdc   : > { %v1930_v19 = vpop.permute.xlu2 %451 }
  0xdd   : > { %v453_v58 = vrot.slane %v1930_v19, 1 }
  0xe1   : > { %828 = vrot.lane.b32.xlu1 %v1909_v12, %s1671_s19  ;;  %818 = vrot.lane.b32.xlu0 %v1912_v13, %s1671_s19  ;;  %s1688_s19 = smov 80  }
  0xe2   : > { %837 = vrot.lane.b32.xlu2 %v1912_v13, %s1672_s21 }
  0xe3   : > { %v319_v23 = vpop.permute.xlu1 %318  ;;  %v300_v24 = vpop.permute.xlu0 %299 }
  0xe4   : > { %v320_v26 = vrot.slane %v319_v23, 1  ;;  %v301_v28 = vrot.slane %v300_v24, 1  ;;  %v1936_v29 = vpop.permute.xlu2 %508 }
  0xe6   : > { %v302_v33 = vsel %vm288_vm4, %v300_v24, %v301_v28  ;;  %v321_v37 = vsel %vm311_vm5, %v319_v23, %v320_v26  ;;  %v396_v24 = vrot.slane %v1921_v16, 1  ;;  %v371_v26 = vmul.f32 %v369_v8, %v364_v9  ;;  %v383_v28 = vld [vmem:[#allocation4 + $0x5] ss:$8 sm:$0x3] }
  0xe7   : > { %v304_v35 = vmul.f32 %v302_v33, %v294_v27  ;;  %v323_v44 = vmul.f32 %v321_v37, %v317_v36  ;;  %v393_v33 = vld [vmem:[#allocation4 + $0x66] ss:$8 sm:$0x3]  ;;  %v390_v36 = vmul.f32 %v388_v61, %v383_v28  ;;  %v450_v9 = vld [vmem:[#allocation4 + $0x71] ss:$8 sm:$0x3]  ;;  %v454_v8 = vsel %vm444_vm12, %v1930_v19, %v453_v58 }
  0xe8   : > { %v526_v58 = vld [vmem:[#allocation4 + $0x75] ss:$8 sm:$0x3]  ;;  %vm577_vm4 = vcmask 146432   ;;  %vm596_vm5 = vcmask 138240  }
  0xe9   : > { %v305_v40 = vadd.f32 %v304_v35, %v291_v34  ;;  %856 = vrot.lane.b32.xlu1 %v1912_v13, %s1673_s22  ;;  %847 = vrot.lane.b32.xlu0 %v1909_v12, %s1672_s21  ;;  %v397_v34 = vsel %vm387_vm9, %v1921_v16, %v396_v24  ;;  %vm672_vm9 = vcmask 105472   ;;  %s1689_s21 = smov 79  }
  0xea   : > { %866 = vrot.lane.b32.xlu2 %v1909_v12, %s1673_s22  ;;  %v399_v41 = vmul.f32 %v397_v34, %v393_v33  ;;  %s1690_s22 = smov 78  }
  0xeb   : > { %v315_v45 = vadd.f32 %v314_v39, %v305_v40  ;;  %v357_v47 = vpop.permute.xlu1 %356  ;;  %v376_v48 = vpop.permute.xlu0 %375  ;;  %v424_v39 = vrot.slane %v1889_v62, 1 }
  0xec   : > { %v358_v51 = vrot.slane %v357_v47, 1  ;;  %v1949_v52 = vpop.permute.xlu2 %536  ;;  %v377_v3 = vrot.slane %v376_v48, 1 }
  0xed   : > { %v324_v55 = vadd.f32 %v323_v44, %v315_v45 }
  0xee   : > { %v359_v0 = vsel %vm349_vm7, %v357_v47, %v358_v51  ;;  %v378_v23 = vsel %vm368_vm8, %v376_v48, %v377_v3  ;;  %v409_v48 = vmul.f32 %v407_v7, %v402_v38  ;;  %v426_v51 = vsel %vm425_vm11, %v1889_v62, %v424_v39 }
  0xef   : > { %v334_v59 = vadd.f32 %v333_v54, %v324_v55  ;;  %v361_v11 = vmul.f32 %v359_v0, %v355_v63  ;;  %v380_v32 = vmul.f32 %v378_v23, %v374_v22  ;;  %v440_v63 = vld [vmem:[#allocation4 + $0x10] ss:$8 sm:$0x3]  ;;  %v445_v0 = vsel %vm444_vm12, %v1917_v14, %v443_v50 }
  0xf0   : > { %v462_v62 = vrot.slane %v1928_v18, 1  ;;  %v481_v23 = vrot.slane %v1893_v2, 1  ;;  %v510_v7 = vrot.slane %v1936_v29, 1  ;;  %vm634_vm7 = vcmask 121856  }
  0xf1   : > { %v343_v5 = vadd.f32 %v342_v60, %v334_v59  ;;  %885 = vrot.lane.b32.xlu1 %v1909_v12, %s1674_s23  ;;  %875 = vrot.lane.b32.xlu0 %v1912_v13, %s1674_s23  ;;  %v428_v59 = vmul.f32 %v426_v51, %v421_v15  ;;  %v516_v51 = vld [vmem:[#allocation4 + $0x14] ss:$8 sm:$0x3]  ;;  %vm653_vm8 = vcmask 113664   ;;  %vm729_vm12 = vcmask 7168   ;;  %s1691_s23 = smov 77  }
  0xf2   : > { %894 = vrot.lane.b32.xlu2 %v1912_v13, %s1675_s25  ;;  %v464_v22 = vsel %vm463_vm13, %v1928_v18, %v462_v62  ;;  %v483_v18 = vsel %vm482_vm14, %v1893_v2, %v481_v23 }
  0xf3   : > { %v353_v10 = vadd.f32 %v352_v4, %v343_v5  ;;  %v414_v20 = vpop.permute.xlu1 %413  ;;  %v433_v21 = vpop.permute.xlu0 %432 }
  0xf4   : > { %v1963_v25 = vpop.permute.xlu2 %565  ;;  %v415_v35 = vrot.slane %v414_v20, 1  ;;  %v434_v45 = vrot.slane %v433_v21, 1 }
  0xf5   : > { %v362_v27 = vadd.f32 %v361_v11, %v353_v10 }
  0xf6   : > { %v416_v44 = vsel %vm406_vm10, %v414_v20, %v415_v35  ;;  %v435_v57 = vsel %vm425_vm11, %v433_v21, %v434_v45  ;;  %v447_v20 = vmul.f32 %v445_v0, %v440_v63  ;;  %v459_v21 = vld [vmem:[#allocation4 + $0x11] ss:$8 sm:$0x3]  ;;  %vm691_vm10 = vcmask 23552  }
  0xf7   : > { %v372_v31 = vadd.f32 %v371_v26, %v362_v27  ;;  %v418_v55 = vmul.f32 %v416_v44, %v412_v43  ;;  %v437_v4 = vmul.f32 %v435_v57, %v431_v56  ;;  %v456_v26 = vmul.f32 %v454_v8, %v450_v9  ;;  %v469_v27 = vld [vmem:[#allocation4 + $0x72] ss:$8 sm:$0x3] }
  0xf8   : > { %v466_v30 = vmul.f32 %v464_v22, %v459_v21  ;;  %v554_v22 = vld [vmem:[#allocation4 + $0x16] ss:$8 sm:$0x3]  ;;  %vm710_vm11 = vcmask 15360  }
  0xf9   : > { %v381_v37 = vadd.f32 %v380_v32, %v372_v31  ;;  %913 = vrot.lane.b32.xlu1 %v1912_v13, %s1676_s27  ;;  %904 = vrot.lane.b32.xlu0 %v1909_v12, %s1675_s25  ;;  %v500_v31 = vrot.slane %v1926_v17, 1  ;;  %v478_v32 = vld [vmem:[#allocation4 + $0x12] ss:$8 sm:$0x3]  ;;  %s1355_s25 = sshll.u32 %s1804_s24, 1 }
  0xfa   : > { %923 = vrot.lane.b32.xlu2 %v1909_v12, %s1676_s27  ;;  %s1358_s27 = sshll.u32 %s1629_s12, 1  ;;  %s1236_s12 = scalar_lea.sflag [#allocation6], %s1804_s24 }
  0xfb   : > { %v391_v40 = vadd.f32 %v390_v36, %v381_v37  ;;  %v471_v16 = vpop.permute.xlu1 %470  ;;  %v490_v42 = vpop.permute.xlu0 %489  ;;  %v488_v37 = vld [vmem:[#allocation4 + $0x73] ss:$8 sm:$0x3]  ;;  %v502_v2 = vsel %vm501_vm15, %v1926_v17, %v500_v31 }
  0xfc   : > { %v1977_v47 = vpop.permute.xlu2 %593  ;;  %v472_v10 = vrot.slane %v471_v16, 1  ;;  %v491_v61 = vrot.slane %v490_v42, 1 }
  0xfd   : > { %v400_v49 = vadd.f32 %v399_v41, %v391_v40  ;;  %v485_v40 = vmul.f32 %v483_v18, %v478_v32 }
  0xfe   : > { %v473_v28 = vsel %vm463_vm13, %v471_v16, %v472_v10  ;;  %v492_v38 = vsel %vm482_vm14, %v490_v42, %v491_v61  ;;  %v497_v16 = vld [vmem:[#allocation4 + $0x13] ss:$8 sm:$0x3]  ;;  %v545_v10 = vld [vmem:[#allocation4 + $0x76] ss:$8 sm:$0x3] }
  0xff   : > { %v410_v54 = vadd.f32 %v409_v48, %v400_v49  ;;  %v475_v34 = vmul.f32 %v473_v28, %v469_v27  ;;  %v494_v45 = vmul.f32 %v492_v38, %v488_v37  ;;  %v507_v48 = vld [vmem:[#allocation4 + $0x74] ss:$8 sm:$0x3]  ;;  %v511_v49 = vsel %vm501_vm15, %v1936_v29, %v510_v7  ;;  %v564_v61 = vld [vmem:[#allocation4 + $0x77] ss:$8 sm:$0x3] }
 0x100   : > { %v504_v50 = vmul.f32 %v502_v2, %v497_v16  ;;  %v513_v56 = vmul.f32 %v511_v49, %v507_v48  ;;  %v583_v38 = vld [vmem:[#allocation4 + $0x80] ss:$8 sm:$0x3]  ;;  %vm760_vm13 = vcmask 1039360   ;;  %vm783_vm14 = vcmask 1031168  }
 0x101   : > { %v419_v60 = vadd.f32 %v418_v55, %v410_v54  ;;  %942 = vrot.lane.b32.xlu1 %v1909_v12, %s1677_s28  ;;  %932 = vrot.lane.b32.xlu0 %v1912_v13, %s1677_s28  ;;  %v538_v54 = vrot.slane %v1949_v52, 1  ;;  %vm802_vm15 = vcmask 1022976  }
 0x102   : > { %951 = vrot.lane.b32.xlu2 %v1912_v13, %s1678_s16 }
 0x103   : > { %v429_v3 = vadd.f32 %v428_v59, %v419_v60  ;;  %v1990_v5 = vpop.permute.xlu1 %527  ;;  %v518_v6 = vpop.permute.xlu0 %517 }
 0x104   : > { %v1994_v11 = vpop.permute.xlu2 %622  ;;  %v519_v43 = vrot.slane %v518_v6, 1  ;;  %v529_v42 = vrot.slane %v1990_v5, 1 }
 0x105   : > { %v438_v14 = vadd.f32 %v437_v4, %v429_v3  ;;  %v535_v3 = vld [vmem:[#allocation4 + $0x15] ss:$8 sm:$0x3]  ;;  %v540_v4 = vsel %vm539_vm2, %v1949_v52, %v538_v54 }
 0x106   : > { %v521_v17 = vsel %vm520_vm1, %v518_v6, %v519_v43  ;;  %v530_v59 = vsel %vm520_vm1, %v1990_v5, %v529_v42  ;;  %v542_v5 = vmul.f32 %v540_v4, %v535_v3  ;;  %v602_v42 = vld [vmem:[#allocation4 + $0x81] ss:$8 sm:$0x3]  ;;  %v630_v3 = vld [vmem:[#allocation4 + $0x22] ss:$8 sm:$0x3] }
 0x107   : > { %v448_v24 = vadd.f32 %v447_v20, %v438_v14  ;;  %v523_v62 = vmul.f32 %v521_v17, %v516_v51  ;;  %v532_v9 = vmul.f32 %v530_v59, %v526_v58  ;;  %v567_v14 = vrot.slane %v1963_v25, 1  ;;  %v621_v58 = vld [vmem:[#allocation4 + $0x82] ss:$8 sm:$0x3] }
 0x108   : > { %vm821_vm1 = vcmask 941056  }
 0x109   : > { %v457_v19 = vadd.f32 %v456_v26, %v448_v24  ;;  %970 = vrot.lane.b32.xlu1 %v1912_v13, %s1679_s20  ;;  %961 = vrot.lane.b32.xlu0 %v1909_v12, %s1678_s16 }
 0x10a   : > { %980 = vrot.lane.b32.xlu2 %v1909_v12, %s1679_s20  ;;  %s1246_s20 = scalar_lea.hbm %s2183_s2, %s1358_s27 }
 0x10b   : > { %v467_v33 = vadd.f32 %v466_v30, %v457_v19  ;;  %v556_v35 = vpop.permute.xlu1 %555  ;;  %v547_v36 = vpop.permute.xlu0 %546  ;;  %v568_v30 = vsel %vm558_vm3, %v1963_v25, %v567_v14  ;;  %v592_v25 = vld [vmem:[#allocation4 + $0x20] ss:$8 sm:$0x3] }
 0x10c   : > { %v2008_v39 = vpop.permute.xlu2 %650  ;;  %v548_v60 = vrot.slane %v547_v36, 1  ;;  %v557_v6 = vrot.slane %v556_v35, 1  ;;  %v570_v37 = vmul.f32 %v568_v30, %v564_v61  ;;  %v659_v61 = vld [vmem:[#allocation4 + $0x84] ss:$8 sm:$0x3] }
 0x10d   : > { %v476_v41 = vadd.f32 %v475_v34, %v467_v33  ;;  %v573_v33 = vld [vmem:[#allocation4 + $0x17] ss:$8 sm:$0x3] }
 0x10e   : > { %v549_v20 = vsel %vm539_vm2, %v547_v36, %v548_v60  ;;  %v559_v23 = vsel %vm558_vm3, %v556_v35, %v557_v6  ;;  %v595_v35 = vrot.slane %v1977_v47, 1  ;;  %v652_v6 = vrot.slane %v2008_v39, 1 }
 0x10f   : > { %v486_v44 = vadd.f32 %v485_v40, %v476_v41  ;;  %v551_v26 = vmul.f32 %v549_v20, %v545_v10  ;;  %v561_v32 = vmul.f32 %v559_v23, %v554_v22  ;;  %v640_v20 = vld [vmem:[#allocation4 + $0x83] ss:$8 sm:$0x3]  ;;  %vm840_vm2 = vcmask 932864  }
 0x110   : > { %v597_v2 = vsel %vm596_vm5, %v1977_v47, %v595_v35  ;;  %vm859_vm3 = vcmask 924672  }
 0x111   : > { %v495_v15 = vadd.f32 %v494_v45, %v486_v44  ;;  %999 = vrot.lane.b32.xlu1 %v1909_v12, %s1680_s29  ;;  %989 = vrot.lane.b32.xlu0 %v1912_v13, %s1680_s29  ;;  %v599_v54 = vmul.f32 %v597_v2, %v592_v25  ;;  %s194_s29 = scalar_lea.vmem [#allocation9], %s1355_s25 }
 0x112   : > { %1008 = vrot.lane.b32.xlu2 %v1912_v13, %s1681_s30 }
 0x113   : > { %v505_v55 = vadd.f32 %v504_v50, %v495_v15  ;;  %v585_v29 = vpop.permute.xlu1 %584  ;;  %v575_v57 = vpop.permute.xlu0 %574  ;;  %v624_v15 = vrot.slane %v1994_v11, 1 }
 0x114   : > { %v2022_v63 = vpop.permute.xlu2 %679  ;;  %v576_v52 = vrot.slane %v575_v57, 1  ;;  %v586_v19 = vrot.slane %v585_v29, 1 }
 0x115   : > { %v514_v0 = vadd.f32 %v513_v56, %v505_v55  ;;  %v611_v55 = vld [vmem:[#allocation4 + $0x21] ss:$8 sm:$0x3]  ;;  %v625_v59 = vsel %vm615_vm6, %v1994_v11, %v624_v15 }
 0x116   : > { %v578_v34 = vsel %vm577_vm4, %v575_v57, %v576_v52  ;;  %v587_v7 = vsel %vm577_vm4, %v585_v29, %v586_v19  ;;  %v649_v52 = vld [vmem:[#allocation4 + $0x23] ss:$8 sm:$0x3]  ;;  %v681_v19 = vrot.slane %v2022_v63, 1  ;;  %vm878_vm4 = vcmask 916480  }
 0x117   : > { %v524_v8 = vadd.f32 %v523_v62, %v514_v0  ;;  %v580_v16 = vmul.f32 %v578_v34, %v573_v33  ;;  %v589_v44 = vmul.f32 %v587_v7, %v583_v38  ;;  %v668_v33 = vld [vmem:[#allocation4 + $0x24] ss:$8 sm:$0x3]  ;;  %v678_v38 = vld [vmem:[#allocation4 + $0x85] ss:$8 sm:$0x3] }
 0x118   : > { %v682_v7 = vsel %vm672_vm9, %v2022_v63, %v681_v19  ;;  %v706_v63 = vld [vmem:[#allocation4 + $0x26] ss:$8 sm:$0x3] }
 0x119   : > { %v533_v21 = vadd.f32 %v532_v9, %v524_v8  ;;  %1027 = vrot.lane.b32.xlu1 %v1912_v13, %s1682_s6  ;;  %1018 = vrot.lane.b32.xlu0 %v1909_v12, %s1681_s30  ;;  %v627_v8 = vmul.f32 %v625_v59, %v621_v58  ;;  %v716_v58 = vld [vmem:[#allocation4 + $0x87] ss:$8 sm:$0x3]  ;;  %s1248_s30 = sshll.u32 %s194_s29, 4  ;;  %s1249_s30 = int_to_ptr.vmem [resolvable:$true] %s1248_s30 }
 0x11a   : > { %1037 = vrot.lane.b32.xlu2 %v1909_v12, %s1682_s6  ;;  %s1250_s6 = sshll.u32 %s1246_s20, 4  ;;  %s1251_s6 = int_to_ptr.hbm [resolvable:$true] %s1250_s6 }
 0x11b   : > { %v543_v24 = vadd.f32 %v542_v5, %v533_v21  ;;  %v613_v27 = vpop.permute.xlu1 %612  ;;  %v604_v28 = vpop.permute.xlu0 %603 }
 0x11c   : > { %v2034_v31 = vpop.permute.xlu2 %707  ;;  %v605_v40 = vrot.slane %v604_v28, 1  ;;  %v614_v43 = vrot.slane %v613_v27, 1 }
 0x11d   : > { %v552_v18 = vadd.f32 %v551_v26, %v543_v24  ;;  %v654_v24 = vsel %vm653_vm8, %v2008_v39, %v652_v6 }
 0x11e   : > { %v606_v50 = vsel %vm596_vm5, %v604_v28, %v605_v40  ;;  %v616_v47 = vsel %vm615_vm6, %v613_v27, %v614_v43  ;;  %v687_v43 = vld [vmem:[#allocation4 + $0x25] ss:$8 sm:$0x3]  ;;  %vm897_vm5 = vcmask 908288   ;;  %vm916_vm6 = vcmask 900096  }
 0x11f   : > { %v562_v36 = vadd.f32 %v561_v32, %v552_v18  ;;  %v608_v57 = vmul.f32 %v606_v50, %v602_v42  ;;  %v618_v0 = vmul.f32 %v616_v47, %v611_v55  ;;  %v656_v18 = vmul.f32 %v654_v24, %v649_v52  ;;  %v697_v42 = vld [vmem:[#allocation4 + $0x86] ss:$8 sm:$0x3] }
 0x121   : > { %v571_v41 = vadd.f32 %v570_v37, %v562_v36  ;;  %1056 = vrot.lane.b32.xlu1 %v1909_v12, %s1683_s7  ;;  %1046 = vrot.lane.b32.xlu0 %v1912_v13, %s1683_s7  ;;  %s1565_s7 = sshra.s32 %s1251_s6, 4  ;;  %s1566_s7 = int_to_ptr.hbm [resolvable:$true] %s1565_s7 }
 0x122   : > { %1065 = vrot.lane.b32.xlu2 %v1912_v13, %s1684_s8  ;;  %p1572_p10 = scmp.lt.s32.totalorder %s1566_s7, %s2183_s2 }
 0x123   : > { %v581_v45 = vadd.f32 %v580_v16, %v571_v41  ;;  %v642_v48 = vpop.permute.xlu1 %641  ;;  %v632_v49 = vpop.permute.xlu0 %631 }
 0x124   : > { %v2046_v51 = vpop.permute.xlu2 %736  ;;  %v633_v56 = vrot.slane %v632_v49, 1  ;;  %v643_v60 = vrot.slane %v642_v48, 1 }
 0x125   : > { %v590_v17 = vadd.f32 %v589_v44, %v581_v45  ;;  %v709_v45 = vrot.slane %v2034_v31, 1 }
 0x126   : > { %v635_v4 = vsel %vm634_vm7, %v632_v49, %v633_v56  ;;  %v644_v14 = vsel %vm634_vm7, %v642_v48, %v643_v60  ;;  %v684_v49 = vmul.f32 %v682_v7, %v678_v38  ;;  %v738_v60 = vrot.slane %v2046_v51, 1 }
 0x127   : > { %v600_v29 = vadd.f32 %v599_v54, %v590_v17  ;;  %v637_v23 = vmul.f32 %v635_v4, %v630_v3  ;;  %v646_v27 = vmul.f32 %v644_v14, %v640_v20  ;;  %v711_v54 = vsel %vm710_vm11, %v2034_v31, %v709_v45  ;;  %v725_v4 = vld [vmem:[#allocation4 + $0x27] ss:$8 sm:$0x3] }
 0x128   : > { %v713_v3 = vmul.f32 %v711_v54, %v706_v63  ;;  %v739_v20 = vsel %vm729_vm12, %v2046_v51, %v738_v60  ;;  %v808_v63 = vld [vmem:[#allocation4 + $0x94] ss:$8 sm:$0x3]  ;;  %vm935_vm7 = vcmask 891904  }
 0x129   : > { %v609_v62 = vadd.f32 %v608_v57, %v600_v29  ;;  %1084 = vrot.lane.b32.xlu1 %v1912_v13, %s1685_s17  ;;  %1075 = vrot.lane.b32.xlu0 %v1909_v12, %s1684_s8  ;;  %s1567_s8 = scalar_lea.hbm %s1566_s7, 2 }
 0x12a   : > { %1094 = vrot.lane.b32.xlu2 %v1909_v12, %s1685_s17  ;;  %p1568_p1 = scmp.ne.s32.totalorder %s1566_s7, %s1567_s8 }
 0x12b   : > { %v619_v9 = vadd.f32 %v618_v0, %v609_v62  ;;  %v670_v10 = vpop.permute.xlu1 %669  ;;  %v661_v11 = vpop.permute.xlu0 %660 }
 0x12c   : > { %v662_v21 = vrot.slane %v661_v11, 1  ;;  %v2057_v5 = vpop.permute.xlu2 %780  ;;  %v671_v26 = vrot.slane %v670_v10, 1  ;;  %p1569_p3 = pnand %p1568_p1, %p1778_p4 }
 0x12d   : > { %v628_v22 = vadd.f32 %v627_v8, %v619_v9 }
 0x12e   : > { %v663_v30 = vsel %vm653_vm8, %v661_v11, %v662_v21  ;;  %v673_v34 = vsel %vm672_vm9, %v670_v10, %v671_v26  ;;  %v735_v10 = vld [vmem:[#allocation4 + $0x90] ss:$8 sm:$0x3]  ;;  %vm954_vm8 = vcmask 809984   ;;  %vm973_vm9 = vcmask 801792   ;;  %p1570_p9 = pneg %p1569_p3 }
 0x12f   : > { %v638_v28 = vadd.f32 %v637_v23, %v628_v22  ;;  %v665_v35 = vmul.f32 %v663_v30, %v659_v61  ;;  %v675_v25 = vmul.f32 %v673_v34, %v668_v33  ;;  %v744_v11 = vld [vmem:[#allocation4 + $0x30] ss:$8 sm:$0x3]  ;;  %v748_v22 = vld [vmem:[#allocation4 + $0x91] ss:$8 sm:$0x3]  ;;  %v741_v24 = vmul.f32 %v739_v20, %v735_v10 }
 0x130   : > { %v745_v52 = vmul.f32 %v744_v11, %v1830_v46  ;;  %v749_v30 = vmul.f32 %v748_v22, %v1854_v53  ;;  %v782_v33 = vrot.slane %v2057_v5, 1  ;;  %v836_v10 = vld [vmem:[#allocation4 + $0x35] ss:$8 sm:$0x3] }
 0x131   : > { %v647_v32 = vadd.f32 %v646_v27, %v638_v28  ;;  %1113 = vrot.lane.b32.xlu1 %v1909_v12, %s1686_s18  ;;  %1103 = vrot.lane.b32.xlu0 %v1912_v13, %s1686_s18 }
 0x132   : > { %1122 = vrot.lane.b32.xlu2 %v1912_v13, %s1687_s15  ;;  %v784_v53 = vsel %vm783_vm14, %v2057_v5, %v782_v33  ;;  %v865_v33 = vld [vmem:[#allocation4 + $0x97] ss:$8 sm:$0x3] }
 0x133   : > { %v657_v39 = vadd.f32 %v656_v18, %v647_v32  ;;  %v699_v36 = vpop.permute.xlu1 %698  ;;  %v689_v37 = vpop.permute.xlu0 %688  ;;  %v752_v32 = vld [vmem:[#allocation4 + $0x31] ss:$8 sm:$0x3] }
 0x134   : > { %v700_v40 = vrot.slane %v699_v36, 1  ;;  %v690_v41 = vrot.slane %v689_v37, 1  ;;  %v2069_v16 = vpop.permute.xlu2 %809 }
 0x135   : > { %v666_v2 = vadd.f32 %v665_v35, %v657_v39  ;;  %v766_v39 = vld [vmem:[#allocation4 + $0x92] ss:$8 sm:$0x3]  ;;  %v811_v5 = vrot.slane %v2069_v16, 1 }
 0x136   : > { %v692_v44 = vsel %vm691_vm10, %v689_v37, %v690_v41  ;;  %v701_v50 = vsel %vm691_vm10, %v699_v36, %v700_v40  ;;  %v779_v37 = vld [vmem:[#allocation4 + $0x32] ss:$8 sm:$0x3]  ;;  %vm992_vm10 = vcmask 793600  }
 0x137   : > { %v676_v48 = vadd.f32 %v675_v25, %v666_v2  ;;  %v694_v17 = vmul.f32 %v692_v44, %v687_v43  ;;  %v703_v55 = vmul.f32 %v701_v50, %v697_v42  ;;  %v789_v2 = vld [vmem:[#allocation4 + $0x93] ss:$8 sm:$0x3]  ;;  %v812_v54 = vsel %vm802_vm15, %v2069_v16, %v811_v5 }
 0x138   : > { %v814_v60 = vmul.f32 %v812_v54, %v808_v63  ;;  %v912_v54 = vld [vmem:[#allocation4 + $0x41] ss:$8 sm:$0x3] }
 0x139   : > { %v685_v15 = vadd.f32 %v684_v49, %v676_v48  ;;  %1141 = vrot.lane.b32.xlu1 %v1912_v13, %s1688_s19  ;;  %1132 = vrot.lane.b32.xlu0 %v1909_v12, %s1687_s15  ;;  %v798_v48 = vld [vmem:[#allocation4 + $0x33] ss:$8 sm:$0x3]  ;;  %s1571_s15 = scalar_lea.hbm %s2183_s2, 4 }
 0x13a   : > { %1151 = vrot.lane.b32.xlu2 %v1909_v12, %s1688_s19  ;;  %p1573_p11 = scmp.lt.s32.totalorder %s1571_s15, %s1567_s8 }
 0x13b   : > { %v695_v47 = vadd.f32 %v694_v17, %v685_v15  ;;  %v727_v56 = vpop.permute.xlu1 %726  ;;  %v718_v29 = vpop.permute.xlu0 %717 }
 0x13c   : > { %v728_v57 = vrot.slane %v727_v56, 1  ;;  %v719_v59 = vrot.slane %v718_v29, 1  ;;  %v2080_v0 = vpop.permute.xlu2 %837  ;;  %p1574_p12 = por %p1573_p11, %p1572_p10 }
 0x13d   : > { %v704_v62 = vadd.f32 %v703_v55, %v695_v47 }
 0x13e   : > { %v730_v6 = vsel %vm729_vm12, %v727_v56, %v728_v57  ;;  %v720_v31 = vsel %vm710_vm11, %v718_v29, %v719_v59  ;;  %v817_v57 = vld [vmem:[#allocation4 + $0x34] ss:$8 sm:$0x3]  ;;  %vm1011_vm11 = vcmask 785408   ;;  %vm1030_vm12 = vcmask 777216   ;;  %p1575_p13 = pnand %p1574_p12, %p1570_p9 }
 0x13f   : > { %v714_v9 = vadd.f32 %v713_v3, %v704_v62  ;;  %v722_v8 = vmul.f32 %v720_v31, %v716_v58  ;;  %v732_v14 = vmul.f32 %v730_v6, %v725_v4  ;;  %v827_v62 = vld [vmem:[#allocation4 + $0x95] ss:$8 sm:$0x3]  ;;  %v839_v6 = vrot.slane %v2080_v0, 1 }
 0x141   : > { %v723_v21 = vadd.f32 %v722_v8, %v714_v9  ;;  %1170 = vrot.lane.b32.xlu1 %v1909_v12, %s1689_s21  ;;  %1160 = vrot.lane.b32.xlu0 %v1912_v13, %s1689_s21  ;;  %v841_v11 = vsel %vm840_vm2, %v2080_v0, %v839_v6 }
 0x142   : > { %1179 = vrot.lane.b32.xlu2 %v1912_v13, %s1690_s22 }
 0x143   : > { %v733_v23 = vadd.f32 %v732_v14, %v723_v21  ;;  %v772_v26 = vpop.permute.xlu1 %771  ;;  %v758_v27 = vpop.permute.xlu0 %757 }
 0x144   : > { %v773_v28 = vrot.slane %v772_v26, 1  ;;  %v759_v51 = vrot.slane %v758_v27, 1  ;;  %v2090_v61 = vpop.permute.xlu2 %866 }
 0x145   : > { %v742_v19 = vadd.f32 %v741_v24, %v733_v23  ;;  %v846_v23 = vld [vmem:[#allocation4 + $0x96] ss:$8 sm:$0x3]  ;;  %v843_v24 = vmul.f32 %v841_v11, %v836_v10  ;;  %v941_v11 = vld [vmem:[#allocation4 + $0xa3] ss:$8 sm:$0x3] }
 0x146   : > { %v761_v18 = vsel %vm760_vm13, %v758_v27, %v759_v51  ;;  %v774_v35 = vsel %vm760_vm13, %v772_v26, %v773_v28  ;;  %v855_v26 = vld [vmem:[#allocation4 + $0x36] ss:$8 sm:$0x3]  ;;  %v868_v51 = vrot.slane %v2090_v61, 1  ;;  %vm1049_vm13 = vcmask 769024  }
 0x147   : > { %v746_v34 = vadd.f32 %v745_v52, %v742_v19  ;;  %v763_v36 = vmul.f32 %v761_v18, %v752_v32  ;;  %v776_v38 = vmul.f32 %v774_v35, %v766_v39 }
 0x149   : > { %v750_v46 = vadd.f32 %v749_v30, %v746_v34  ;;  %1198 = vrot.lane.b32.xlu1 %v1912_v13, %s1691_s23  ;;  %1189 = vrot.lane.b32.xlu0 %v1909_v12, %s1690_s22  ;;  %v786_v13 = vmul.f32 %v784_v53, %v779_v37  ;;  %v869_v34 = vsel %vm859_vm3, %v2090_v61, %v868_v51  ;;  %v874_v37 = vld [vmem:[#allocation4 + $0x37] ss:$8 sm:$0x3]  ;;  %v893_v61 = vld [vmem:[#allocation4 + $0x40] ss:$8 sm:$0x3] }
 0x14a   : > { %1208 = vrot.lane.b32.xlu2 %v1909_v12, %s1691_s23 }
 0x14b   : > { %v764_v7 = vadd.f32 %v763_v36, %v750_v46  ;;  %v800_v40 = vpop.permute.xlu1 %799  ;;  %v791_v41 = vpop.permute.xlu0 %790 }
 0x14c   : > { %v801_v25 = vrot.slane %v800_v40, 1  ;;  %v792_v43 = vrot.slane %v791_v41, 1  ;;  %v2099_v44 = vpop.permute.xlu2 %894 }
 0x14d   : > { %v777_v45 = vadd.f32 %v776_v38, %v764_v7  ;;  %v871_v38 = vmul.f32 %v869_v34, %v865_v33  ;;  %v884_v7 = vld [vmem:[#allocation4 + $0xa0] ss:$8 sm:$0x3]  ;;  %v969_v34 = vld [vmem:[#allocation4 + $0x44] ss:$8 sm:$0x3] }
 0x14e   : > { %v803_v49 = vsel %vm802_vm15, %v800_v40, %v801_v25  ;;  %v793_v42 = vsel %vm783_vm14, %v791_v41, %v792_v43  ;;  %v896_v25 = vrot.slane %v2099_v44, 1  ;;  %vm1068_vm14 = vcmask 760832  }
 0x14f   : > { %v787_v12 = vadd.f32 %v786_v13, %v777_v45  ;;  %v795_v50 = vmul.f32 %v793_v42, %v789_v2  ;;  %v805_v15 = vmul.f32 %v803_v49, %v798_v48  ;;  %vm1087_vm15 = vcmask 678912  }
 0x150   : > { %v898_v49 = vsel %vm897_vm5, %v2099_v44, %v896_v25  ;;  %v922_v44 = vld [vmem:[#allocation4 + $0xa2] ss:$8 sm:$0x3] }
 0x151   : > { %v796_v17 = vadd.f32 %v795_v50, %v787_v12  ;;  %v900_v63 = vmul.f32 %v898_v49, %v893_v61  ;;  %v998_v61 = vld [vmem:[#allocation4 + $0xa6] ss:$8 sm:$0x3] }
 0x153   : > { %v806_v55 = vadd.f32 %v805_v15, %v796_v17  ;;  %v829_v47 = vpop.permute.xlu1 %828  ;;  %v819_v56 = vpop.permute.xlu0 %818  ;;  %v903_v15 = vld [vmem:[#allocation4 + $0xa1] ss:$8 sm:$0x3] }
 0x154   : > { %v830_v29 = vrot.slane %v829_v47, 1  ;;  %v820_v58 = vrot.slane %v819_v56, 1  ;;  %v2106_v59 = vpop.permute.xlu2 %923 }
 0x155   : > { %v815_v31 = vadd.f32 %v814_v60, %v806_v55 }
 0x156   : > { %v831_v3 = vsel %vm821_vm1, %v829_v47, %v830_v29  ;;  %v822_v4 = vsel %vm821_vm1, %v819_v56, %v820_v58  ;;  %v925_v56 = vrot.slane %v2106_v59, 1  ;;  %vm1106_vm1 = vcmask 670720  }
 0x157   : > { %v824_v9 = vmul.f32 %v822_v4, %v817_v57  ;;  %v833_v8 = vmul.f32 %v831_v3, %v827_v62 }
 0x158   : > { %v926_v62 = vsel %vm916_vm6, %v2106_v59, %v925_v56  ;;  %v950_v59 = vld [vmem:[#allocation4 + $0x43] ss:$8 sm:$0x3] }
 0x159   : > { %v825_v16 = vadd.f32 %v824_v9, %v815_v31  ;;  %v928_v10 = vmul.f32 %v926_v62, %v922_v44  ;;  %v1026_v44 = vld [vmem:[#allocation4 + $0x47] ss:$8 sm:$0x3] }
 0x15b   : > { %v834_v20 = vadd.f32 %v833_v8, %v825_v16  ;;  %v857_v14 = vpop.permute.xlu1 %856  ;;  %v848_v21 = vpop.permute.xlu0 %847  ;;  %v931_v8 = vld [vmem:[#allocation4 + $0x42] ss:$8 sm:$0x3] }
 0x15c   : > { %v858_v22 = vrot.slane %v857_v14, 1  ;;  %v849_v52 = vrot.slane %v848_v21, 1  ;;  %v2112_v30 = vpop.permute.xlu2 %951 }
 0x15d   : > { %v844_v19 = vadd.f32 %v843_v24, %v834_v20 }
 0x15e   : > { %v860_v27 = vsel %vm859_vm3, %v857_v14, %v858_v22  ;;  %v850_v28 = vsel %vm840_vm2, %v848_v21, %v849_v52  ;;  %v953_v21 = vrot.slane %v2112_v30, 1  ;;  %vm1125_vm2 = vcmask 662528  }
 0x15f   : > { %v852_v32 = vmul.f32 %v850_v28, %v846_v23  ;;  %v862_v18 = vmul.f32 %v860_v27, %v855_v26  ;;  %vm1144_vm3 = vcmask 654336  }
 0x160   : > { %v955_v26 = vsel %vm954_vm8, %v2112_v30, %v953_v21  ;;  %v979_v30 = vld [vmem:[#allocation4 + $0xa5] ss:$8 sm:$0x3] }
 0x161   : > { %v853_v0 = vadd.f32 %v852_v32, %v844_v19  ;;  %v960_v32 = vld [vmem:[#allocation4 + $0xa4] ss:$8 sm:$0x3]  ;;  %v957_v33 = vmul.f32 %v955_v26, %v950_v59  ;;  %v1055_v59 = vld [vmem:[#allocation4 + $0xb1] ss:$8 sm:$0x3] }
 0x163   : > { %v863_v39 = vadd.f32 %v862_v18, %v853_v0  ;;  %v886_v35 = vpop.permute.xlu1 %885  ;;  %v876_v46 = vpop.permute.xlu0 %875 }
 0x164   : > { %v887_v36 = vrot.slane %v886_v35, 1  ;;  %v877_v53 = vrot.slane %v876_v46, 1  ;;  %v981_v45 = vpop.permute.xlu2 %980 }
 0x165   : > { %v872_v2 = vadd.f32 %v871_v38, %v863_v39 }
 0x166   : > { %v888_v40 = vsel %vm878_vm4, %v886_v35, %v887_v36  ;;  %v879_v41 = vsel %vm878_vm4, %v876_v46, %v877_v53  ;;  %v982_v46 = vrot.slane %v981_v45, 1  ;;  %vm1163_vm4 = vcmask 646144  }
 0x167   : > { %v881_v43 = vmul.f32 %v879_v41, %v874_v37  ;;  %v890_v13 = vmul.f32 %v888_v40, %v884_v7 }
 0x168   : > { %v983_v7 = vsel %vm973_vm9, %v981_v45, %v982_v46 }
 0x169   : > { %v882_v48 = vadd.f32 %v881_v43, %v872_v2  ;;  %v988_v43 = vld [vmem:[#allocation4 + $0x45] ss:$8 sm:$0x3] }
 0x16b   : > { %v891_v42 = vadd.f32 %v890_v13, %v882_v48  ;;  %v914_v5 = vpop.permute.xlu1 %913  ;;  %v905_v12 = vpop.permute.xlu0 %904  ;;  %v985_v48 = vmul.f32 %v983_v7, %v979_v30  ;;  %v1083_v30 = vld [vmem:[#allocation4 + $0x52] ss:$8 sm:$0x3] }
 0x16c   : > { %v915_v50 = vrot.slane %v914_v5, 1  ;;  %v906_v17 = vrot.slane %v905_v12, 1  ;;  %v1009_v3 = vpop.permute.xlu2 %1008 }
 0x16d   : > { %v901_v29 = vadd.f32 %v900_v63, %v891_v42 }
 0x16e   : > { %v917_v55 = vsel %vm916_vm6, %v914_v5, %v915_v50  ;;  %v907_v47 = vsel %vm897_vm5, %v905_v12, %v906_v17  ;;  %v1010_v5 = vrot.slane %v1009_v3, 1  ;;  %vm1182_vm5 = vcmask 637952  }
 0x16f   : > { %v909_v57 = vmul.f32 %v907_v47, %v903_v15  ;;  %v919_v58 = vmul.f32 %v917_v55, %v912_v54  ;;  %v1007_v54 = vld [vmem:[#allocation4 + $0x46] ss:$8 sm:$0x3]  ;;  %vm1201_vm6 = vcmask 629760  }
 0x170   : > { %v1012_v45 = vsel %vm1011_vm11, %v1009_v3, %v1010_v5 }
 0x171   : > { %v910_v60 = vadd.f32 %v909_v57, %v901_v29  ;;  %v1017_v57 = vld [vmem:[#allocation4 + $0xa7] ss:$8 sm:$0x3] }
 0x173   : > { %v920_v4 = vadd.f32 %v919_v58, %v910_v60  ;;  %v943_v6 = vpop.permute.xlu1 %942  ;;  %v933_v31 = vpop.permute.xlu0 %932  ;;  %v1014_v60 = vmul.f32 %v1012_v45, %v1007_v54  ;;  %v1112_v54 = vld [vmem:[#allocation4 + $0xb4] ss:$8 sm:$0x3] }
 0x174   : > { %v944_v9 = vrot.slane %v943_v6, 1  ;;  %v934_v16 = vrot.slane %v933_v31, 1  ;;  %v1038_v0 = vpop.permute.xlu2 %1037 }
 0x175   : > { %v929_v22 = vadd.f32 %v928_v10, %v920_v4 }
 0x176   : > { %v945_v20 = vsel %vm935_vm7, %v943_v6, %v944_v9  ;;  %v936_v14 = vsel %vm935_vm7, %v933_v31, %v934_v16  ;;  %v1039_v6 = vrot.slane %v1038_v0, 1 }
 0x177   : > { %v938_v23 = vmul.f32 %v936_v14, %v931_v8  ;;  %v947_v52 = vmul.f32 %v945_v20, %v941_v11  ;;  %v1036_v11 = vld [vmem:[#allocation4 + $0xb0] ss:$8 sm:$0x3] }
 0x178   : > { %v1040_v3 = vsel %vm1030_vm12, %v1038_v0, %v1039_v6 }
 0x179   : > { %v939_v24 = vadd.f32 %v938_v23, %v929_v22  ;;  %v1045_v23 = vld [vmem:[#allocation4 + $0x50] ss:$8 sm:$0x3] }
 0x17b   : > { %v948_v27 = vadd.f32 %v947_v52, %v939_v24  ;;  %v971_v28 = vpop.permute.xlu1 %970  ;;  %v962_v51 = vpop.permute.xlu0 %961  ;;  %v1042_v24 = vmul.f32 %v1040_v3, %v1036_v11 }
 0x17c   : > { %v972_v19 = vrot.slane %v971_v28, 1  ;;  %v963_v18 = vrot.slane %v962_v51, 1  ;;  %v1066_v12 = vpop.permute.xlu2 %1065 }
 0x17d   : > { %v958_v36 = vadd.f32 %v957_v33, %v948_v27  ;;  %v1064_v33 = vld [vmem:[#allocation4 + $0x51] ss:$8 sm:$0x3] }
 0x17e   : > { %v974_v39 = vsel %vm973_vm9, %v971_v28, %v972_v19  ;;  %v964_v35 = vsel %vm954_vm8, %v962_v51, %v963_v18  ;;  %v1067_v28 = vrot.slane %v1066_v12, 1 }
 0x17f   : > { %v966_v37 = vmul.f32 %v964_v35, %v960_v32  ;;  %v976_v53 = vmul.f32 %v974_v39, %v969_v34 }
 0x180   : > { %v1069_v0 = vsel %vm1068_vm14, %v1066_v12, %v1067_v28 }
 0x181   : > { %v967_v38 = vadd.f32 %v966_v37, %v958_v36  ;;  %v1074_v37 = vld [vmem:[#allocation4 + $0xb2] ss:$8 sm:$0x3] }
 0x183   : > { %v977_v40 = vadd.f32 %v976_v53, %v967_v38  ;;  %v1000_v41 = vpop.permute.xlu1 %999  ;;  %v990_v25 = vpop.permute.xlu0 %989  ;;  %v1071_v38 = vmul.f32 %v1069_v0, %v1064_v33  ;;  %v1169_v33 = vld [vmem:[#allocation4 + $0xb7] ss:$8 sm:$0x3] }
 0x184   : > { %v1001_v2 = vrot.slane %v1000_v41, 1  ;;  %v991_v13 = vrot.slane %v990_v25, 1  ;;  %v1095_v8 = vpop.permute.xlu2 %1094 }
 0x185   : > { %v986_v50 = vadd.f32 %v985_v48, %v977_v40  ;;  %v1093_v48 = vld [vmem:[#allocation4 + $0xb3] ss:$8 sm:$0x3] }
 0x186   : > { %v1002_v49 = vsel %vm992_vm10, %v1000_v41, %v1001_v2  ;;  %v993_v42 = vsel %vm992_vm10, %v990_v25, %v991_v13  ;;  %v1096_v41 = vrot.slane %v1095_v8, 1 }
 0x187   : > { %v995_v15 = vmul.f32 %v993_v42, %v988_v43  ;;  %v1004_v17 = vmul.f32 %v1002_v49, %v998_v61 }
 0x188   : > { %v1097_v61 = vsel %vm1087_vm15, %v1095_v8, %v1096_v41 }
 0x189   : > { %v996_v63 = vadd.f32 %v995_v15, %v986_v50  ;;  %v1102_v50 = vld [vmem:[#allocation4 + $0x53] ss:$8 sm:$0x3] }
 0x18b   : > { %v1005_v55 = vadd.f32 %v1004_v17, %v996_v63  ;;  %v1028_v47 = vpop.permute.xlu1 %1027  ;;  %v1019_v56 = vpop.permute.xlu0 %1018  ;;  %v1099_v17 = vmul.f32 %v1097_v61, %v1093_v48  ;;  %v1197_v61 = vld [vmem:[#allocation4 + $0x60] ss:$8 sm:$0x3] }
 0x18c   : > { %v1029_v29 = vrot.slane %v1028_v47, 1  ;;  %v1020_v58 = vrot.slane %v1019_v56, 1  ;;  %v1123_v34 = vpop.permute.xlu2 %1122 }
 0x18d   : > { %v1015_v31 = vadd.f32 %v1014_v60, %v1005_v55  ;;  %v1121_v60 = vld [vmem:[#allocation4 + $0x54] ss:$8 sm:$0x3] }
 0x18e   : > { %v1031_v62 = vsel %vm1030_vm12, %v1028_v47, %v1029_v29  ;;  %v1021_v4 = vsel %vm1011_vm11, %v1019_v56, %v1020_v58  ;;  %v1124_v47 = vrot.slane %v1123_v34, 1 }
 0x18f   : > { %v1023_v9 = vmul.f32 %v1021_v4, %v1017_v57  ;;  %v1033_v16 = vmul.f32 %v1031_v62, %v1026_v44 }
 0x190   : > { %v1126_v44 = vsel %vm1125_vm2, %v1123_v34, %v1124_v47 }
 0x191   : > { %v1024_v10 = vadd.f32 %v1023_v9, %v1015_v31  ;;  %v1131_v9 = vld [vmem:[#allocation4 + $0xb5] ss:$8 sm:$0x3] }
 0x193   : > { %v1034_v20 = vadd.f32 %v1033_v16, %v1024_v10  ;;  %v1057_v14 = vpop.permute.xlu1 %1056  ;;  %v1047_v21 = vpop.permute.xlu0 %1046  ;;  %v1128_v16 = vmul.f32 %v1126_v44, %v1121_v60  ;;  %v1140_v10 = vld [vmem:[#allocation4 + $0x55] ss:$8 sm:$0x3] }
 0x194   : > { %v1058_v22 = vrot.slane %v1057_v14, 1  ;;  %v1048_v52 = vrot.slane %v1047_v21, 1  ;;  %v1152_v63 = vpop.permute.xlu2 %1151 }
 0x195   : > { %v1043_v51 = vadd.f32 %v1042_v24, %v1034_v20  ;;  %v1153_v20 = vrot.slane %v1152_v63, 1  ;;  %v1150_v24 = vld [vmem:[#allocation4 + $0xb6] ss:$8 sm:$0x3] }
 0x196   : > { %v1059_v26 = vsel %vm1049_vm13, %v1057_v14, %v1058_v22  ;;  %v1050_v27 = vsel %vm1049_vm13, %v1047_v21, %v1048_v52 }
 0x197   : > { %v1052_v19 = vmul.f32 %v1050_v27, %v1045_v23  ;;  %v1061_v32 = vmul.f32 %v1059_v26, %v1055_v59  ;;  %v1154_v59 = vsel %vm1144_vm3, %v1152_v63, %v1153_v20 }
 0x199   : > { %v1053_v18 = vadd.f32 %v1052_v19, %v1043_v51  ;;  %v1159_v19 = vld [vmem:[#allocation4 + $0x56] ss:$8 sm:$0x3] }
 0x19b   : > { %v1062_v39 = vadd.f32 %v1061_v32, %v1053_v18  ;;  %v1085_v35 = vpop.permute.xlu1 %1084  ;;  %v1076_v46 = vpop.permute.xlu0 %1075  ;;  %v1156_v18 = vmul.f32 %v1154_v59, %v1150_v24 }
 0x19c   : > { %v1086_v36 = vrot.slane %v1085_v35, 1  ;;  %v1077_v53 = vrot.slane %v1076_v46, 1  ;;  %v1180_v22 = vpop.permute.xlu2 %1179 }
 0x19d   : > { %v1072_v25 = vadd.f32 %v1071_v38, %v1062_v39  ;;  %v1181_v39 = vrot.slane %v1180_v22, 1  ;;  %v1178_v38 = vld [vmem:[#allocation4 + $0x57] ss:$8 sm:$0x3] }
 0x19e   : > { %v1088_v7 = vsel %vm1087_vm15, %v1085_v35, %v1086_v36  ;;  %v1078_v40 = vsel %vm1068_vm14, %v1076_v46, %v1077_v53 }
 0x19f   : > { %v1080_v2 = vmul.f32 %v1078_v40, %v1074_v37  ;;  %v1090_v43 = vmul.f32 %v1088_v7, %v1083_v30  ;;  %v1183_v30 = vsel %vm1182_vm5, %v1180_v22, %v1181_v39 }
 0x1a0   : > { %v1185_v48 = vmul.f32 %v1183_v30, %v1178_v38 }
 0x1a1   : > { %v1081_v13 = vadd.f32 %v1080_v2, %v1072_v25  ;;  %v1188_v2 = vld [vmem:[#allocation4 + $0xc0] ss:$8 sm:$0x3] }
 0x1a3   : > { %v1091_v49 = vadd.f32 %v1090_v43, %v1081_v13  ;;  %v1114_v42 = vpop.permute.xlu1 %1113  ;;  %v1104_v5 = vpop.permute.xlu0 %1103 }
 0x1a4   : > { %v1115_v12 = vrot.slane %v1114_v42, 1  ;;  %v1105_v15 = vrot.slane %v1104_v5, 1  ;;  %v1209_v53 = vpop.permute.xlu2 %1208 }
 0x1a5   : > { %v1100_v56 = vadd.f32 %v1099_v17, %v1091_v49  ;;  %v1210_v13 = vrot.slane %v1209_v53, 1 }
 0x1a6   : > { %v1116_v45 = vsel %vm1106_vm1, %v1114_v42, %v1115_v12  ;;  %v1107_v55 = vsel %vm1106_vm1, %v1104_v5, %v1105_v15 }
 0x1a7   : > { %v1109_v29 = vmul.f32 %v1107_v55, %v1102_v50  ;;  %v1118_v57 = vmul.f32 %v1116_v45, %v1112_v54  ;;  %v1207_v50 = vld [vmem:[#allocation4 + $0xc1] ss:$8 sm:$0x3]  ;;  %v1211_v15 = vsel %vm1201_vm6, %v1209_v53, %v1210_v13 }
 0x1a8   : > { %v1213_v45 = vmul.f32 %v1211_v15, %v1207_v50 }
 0x1a9   : > { %v1110_v58 = vadd.f32 %v1109_v29, %v1100_v56 }
 0x1ab   : > { %v1119_v62 = vadd.f32 %v1118_v57, %v1110_v58  ;;  %v1142_v4 = vpop.permute.xlu1 %1141  ;;  %v1133_v6 = vpop.permute.xlu0 %1132 }
 0x1ac   : > { %v1143_v31 = vrot.slane %v1142_v4, 1  ;;  %v1134_v8 = vrot.slane %v1133_v6, 1 }
 0x1ad   : > { %v1129_v14 = vadd.f32 %v1128_v16, %v1119_v62 }
 0x1ae   : > { %v1145_v11 = vsel %vm1144_vm3, %v1142_v4, %v1143_v31  ;;  %v1135_v3 = vsel %vm1125_vm2, %v1133_v6, %v1134_v8 }
 0x1af   : > { %v1137_v21 = vmul.f32 %v1135_v3, %v1131_v9  ;;  %v1147_v23 = vmul.f32 %v1145_v11, %v1140_v10 }
 0x1b1   : > { %v1138_v52 = vadd.f32 %v1137_v21, %v1129_v14 }
 0x1b3   : > { %v1148_v26 = vadd.f32 %v1147_v23, %v1138_v52  ;;  %v1171_v27 = vpop.permute.xlu1 %1170  ;;  %v1161_v28 = vpop.permute.xlu0 %1160 }
 0x1b4   : > { %v1172_v51 = vrot.slane %v1171_v27, 1  ;;  %v1162_v32 = vrot.slane %v1161_v28, 1 }
 0x1b5   : > { %v1157_v35 = vadd.f32 %v1156_v18, %v1148_v26 }
 0x1b6   : > { %v1173_v0 = vsel %vm1163_vm4, %v1171_v27, %v1172_v51  ;;  %v1164_v34 = vsel %vm1163_vm4, %v1161_v28, %v1162_v32 }
 0x1b7   : > { %v1166_v46 = vmul.f32 %v1164_v34, %v1159_v19  ;;  %v1175_v36 = vmul.f32 %v1173_v0, %v1169_v33 }
 0x1b9   : > { %v1167_v37 = vadd.f32 %v1166_v46, %v1157_v35 }
 0x1bb   : > { %v1176_v7 = vadd.f32 %v1175_v36, %v1167_v37  ;;  %v1199_v40 = vpop.permute.xlu1 %1198  ;;  %v1190_v41 = vpop.permute.xlu0 %1189 }
 0x1bc   : > { %v1200_v25 = vrot.slane %v1199_v40, 1  ;;  %v1191_v43 = vrot.slane %v1190_v41, 1 }
 0x1bd   : > { %v1186_v5 = vadd.f32 %v1185_v48, %v1176_v7 }
 0x1be   : > { %v1202_v49 = vsel %vm1201_vm6, %v1199_v40, %v1200_v25  ;;  %v1192_v42 = vsel %vm1182_vm5, %v1190_v41, %v1191_v43 }
 0x1bf   : > { %v1194_v12 = vmul.f32 %v1192_v42, %v1188_v2  ;;  %v1204_v17 = vmul.f32 %v1202_v49, %v1197_v61 }
 0x1c1   : > { %v1195_v63 = vadd.f32 %v1194_v12, %v1186_v5 }
 0x1c3   : > { %v1205_v54 = vadd.f32 %v1204_v17, %v1195_v63 }
 0x1c5   : > { %v1214_v55 = vadd.f32 %v1213_v45, %v1205_v54 }
 0x1c7   : > { %v1356_v47 = vmul.f32 -1.442695, %v1214_v55 }
 0x1c9   : > { %1487 = vpow2.f32 %v1356_v47 }
 0x1cf   : > { %v1488_v56 = vpop.eup %1487 }
 0x1d0   : > { %v1218_v29 = vadd.f32 1.0, %v1488_v56 }
 0x1d2   : > { %1489 = vrcp.f32 %v1218_v29  ;;  %v1230_v44 = vand.u32 2147483648, %v1218_v29  ;;  %v1228_v4 = vand.u32 2147483647, %v1218_v29  ;;  %vm1224_vm8 = vweird.f32 %v1218_v29 }
 0x1d4   : > { %v1231_v31 = vor.u32 1.1754944e-38, %v1230_v44  ;;  %vm1229_vm10 = vcmp.eq.f32.partialorder %v1228_v4, 8.507059e+37 }
 0x1d8   : > { %v1490_v57 = vpop.eup %1489 }
 0x1d9   : > { %v1220_v58 = vmul.f32 %v1490_v57, %v1218_v29  ;;  %vm1225_vm7 = vweird.f32 %v1490_v57 }
 0x1da   : > { %vm1226_vm9 = vmor %vm1224_vm8, %vm1225_vm7 }
 0x1db   : > { %v1221_v60 = vsub.f32 1.0, %v1220_v58 }
 0x1dd   : > { %v1222_v62 = vmul.f32 %v1490_v57, %v1221_v60 }
 0x1df   : > { %v1223_v6 = vadd.f32 %v1490_v57, %v1222_v62 }
 0x1e1   : > { %v1227_v9 = vsel %vm1226_vm9, %v1490_v57, %v1223_v6 }
 0x1e2   : > { %v1232_v8 = vsel %vm1229_vm10, %v1231_v31, %v1227_v9 }
 0x1e3   : > { %1234 = vst.msk [vmem:[%s194_s29] sm:$0x3] %vm1812_vm0, %v1232_v8 }
 0x1e4   : > { %1578 = shalt.err (!%p1575_p13)
}
 0x1e5   : > { %1368 = dma.vmem_to_hbm [thread:$0]  (%p1778_p4), %s1249_s30, 32, %s1251_s6, %s1236_s12  }
 0x1e6 PF: > { %s1262_s24 = sand.u32 1, %s1617_s9   ;;  %p1379_p0 = pnand %p1348_p6, %p1786_p7 }
 0x1e7   : > { %s1263_s22 = scalar_lea.sflag [#allocation6], %s1262_s24 }
 0x1e8   : > { %p1380_p2 = pneg %p1379_p0 }
 0x1ea   : > { %1612 = dma.done.wait (%p1380_p2), %s1263_s22, 32  }
 0x1eb   : > { %1614 = vsyncadd (%p1380_p2), %s1263_s22, 4294967264  ;;  %s19_s14 = sadd.s32 1, %s1637_s14   ;;  %s2192_s9 = smov %s1621_s10 }
 0x1ec   : > { %p16_p5 = scmp.ge.s32.totalorder %s19_s14, 4   ;;  %s2193_s10 = smov %s1625_s11 }
 0x1ed   : > { %s2194_s11 = smov %s1784_s4  ;;  %s2195_s12 = smov %s1633_s13 }
 0x1ee   : > { %s2196_s13 = smov %s2198_s26  ;;  %18 = sbr.rel (!%p16_p5) target bundleno = 7 (0x7), region = 183 }
 0x1f3   :  { %1269 = vsyncpa [#allocation5], 1 }
 0x1f4   :  { %1271 = vsyncpa [#allocation5 + $0x1], 1 }
 0x1f5   :  { %1272 = vsyncpa [#allocation8], 1 }
 0x1f6   :  { %1274 = vsyncpa [#allocation8 + $0x1], 1 }
 0x1f7   :  { %1275 = vsyncpa [#allocation6], 1 }
 0x1f8   :  { %1277 = vsyncpa [#allocation6 + $0x1], 1 }

</bundles_post_ra>
